<compile_context>
chip_gen: v6e
topology: v6e:2x2x1
jax: 0.10.0
libtpu: 0.0.40
codegen_flags: <defaults>
</compile_context>

<pallas_src>
import functools

import jax
import jax.numpy as jnp
from jax.experimental import pallas as pl
from jax.experimental.pallas import tpu as pltpu


LANE = 128     # lane-dense padded width for the logits output
IN_PAD = 128   # padded input-feature width (K of first matmul)
BLOCK_M = 256  # batch rows per grid step


# ------------------------------ fused kernel -------------------------------

def fused_mlp_kernel(x_ref, w1_ref, w2_ref, w3_ref, w4_ref, bias_ref, o_ref):
    """Whole forward pass for one batch block.

    bias_ref rows (f32, each length 128):
      0: b1*scale1 + shift1   1: shift1
      2: b2*scale2 + shift2   3: shift2
      4: b3*scale3 + shift3   5: shift3
      6: b4 (padded cols poisoned to -1e30)   7: unused
    """

    def row(r):                                   # static (1, 128) f32 view
        return bias_ref[pl.ds(r, 1), :]

    h = x_ref[...].astype(jnp.bfloat16)           # f32 -> bf16 cast in-kernel

    def hidden(h_bf16, w_ref, br, sr):
        y = jnp.dot(h_bf16, w_ref[...], preferred_element_type=jnp.float32)
        # BN(ReLU(xW+b)) with scale folded into W:  max(y + (b'+shift), shift)
        y = jnp.maximum(y + row(br), row(sr))
        return y.astype(jnp.bfloat16)             # next MXU operand

    h = hidden(h, w1_ref, 0, 1)                   # linear1 -> ReLU -> norm1
    h = hidden(h, w2_ref, 2, 3)                   # linear2 -> ReLU -> norm2
    h = hidden(h, w3_ref, 4, 5)                   # linear3 -> ReLU -> norm3

    # linear4 (128-lane padded, padded bias = -1e30) -> LogSoftmax over dim=1
    y = jnp.dot(h, w4_ref[...], preferred_element_type=jnp.float32) + row(6)
    m = jnp.max(y, axis=-1, keepdims=True)
    z = y - m
    lse = jnp.log(jnp.sum(jnp.exp(z), axis=-1, keepdims=True))
    o_ref[...] = (z - lse).astype(o_ref.dtype)    # lane-dense bf16 store


def quant_loss_mnist_log_forward(x, params, out_features, block_m=BLOCK_M):
    """x: (B, in_features) f32.  Returns (B, out_features) f32 log-probs."""
    w1, w2, w3, w4, bias = params
    B, in_f = x.shape
    in_pad = w1.shape[0]

    # Pad feature dim (free compute: zero x cols x zero W1 rows).
    if in_f < in_pad:
        x = jnp.pad(x, ((0, 0), (0, in_pad - in_f)))

    # Pad batch to a multiple of the block size.
    bm = block_m
    b_pad = pl.cdiv(B, bm) * bm
    if b_pad != B:
        x = jnp.pad(x, ((0, b_pad - B), (0, 0)))

    out_pad = pl.pallas_call(
        fused_mlp_kernel,
        out_shape=jax.ShapeDtypeStruct((b_pad, LANE), jnp.bfloat16),
        grid=(b_pad // bm,),
        in_specs=[
            pl.BlockSpec((bm, in_pad), lambda i: (i, 0)),      # x: streamed
            pl.BlockSpec(w1.shape, lambda i: (0, 0)),          # weights stay
            pl.BlockSpec(w2.shape, lambda i: (0, 0)),          #   VMEM-resident
            pl.BlockSpec(w3.shape, lambda i: (0, 0)),
            pl.BlockSpec(w4.shape, lambda i: (0, 0)),
            pl.BlockSpec(bias.shape, lambda i: (0, 0)),
        ],
        out_specs=pl.BlockSpec((bm, LANE), lambda i: (i, 0)),
        compiler_params=pltpu.CompilerParams(
            dimension_semantics=("parallel",)),                # v7x 2-TC shard
    )(x, w1, w2, w3, w4, bias)

    return out_pad[:B, :out_features].astype(jnp.float32)


# -------------------------- parameter construction -------------------------

def log_quantize(w, gamma=2.0, init=0.25, size=5):
    """Quantize |w| onto log-spaced levels {init * gamma^-k, k=0..size-1},
    preserving sign (reconstruction of LinearQuantLog's weight codebook)."""
    eps = 1e-12
    mag = jnp.maximum(jnp.abs(w), eps)
    k = jnp.round(jnp.log(init / mag) / jnp.log(gamma))
    k = jnp.clip(k, 0.0, size - 1.0)
    q = init * (gamma ** (-k))
    return jnp.sign(w) * q


def make_linear_params(key, in_f, out_f, gamma, init, size):
    kw, kb = jax.random.split(key)
    bound = 1.0 / jnp.sqrt(jnp.asarray(in_f, jnp.float32))
    w = jax.random.uniform(kw, (out_f, in_f), jnp.float32, -bound, bound)
    b = jax.random.uniform(kb, (out_f,), jnp.float32, -bound, bound)
    w_q = log_quantize(w, gamma=gamma, init=init, size=size)
    return w_q.T, b  # (in, out) so kernel does x @ W_t


def make_bn_scale_shift(key, feat, eps=1e-4):
    km, kv = jax.random.split(key)
    running_mean = jax.random.normal(km, (feat,), jnp.float32) * 0.1
    running_var = jax.random.uniform(kv, (feat,), jnp.float32, 0.5, 1.5)
    weight = jnp.ones((feat,), jnp.float32)   # BN affine gamma
    bias = jnp.zeros((feat,), jnp.float32)    # BN affine beta
    scale = weight / jnp.sqrt(running_var + eps)
    shift = bias - running_mean * scale
    return scale, shift


def make_hidden_layer(klin, kbn, in_f, out_f, gamma, init, size, pad_in=None):
    """Quantized Linear + BN folded.  Returns W' (pad_in,out_f) bf16,
    fused bias b*scale+shift (f32), shift (f32)."""
    w_t, b = make_linear_params(klin, in_f, out_f, gamma, init, size)
    scale, shift = make_bn_scale_shift(kbn, out_f)
    # BN folding through ReLU requires scale > 0 for every feature.
    assert bool(jnp.all(scale > 0.0)), "BN scale must be positive to fold"
    w_fold = w_t * scale[None, :]
    if pad_in is not None and pad_in > in_f:
        w_fold = jnp.pad(w_fold, ((0, pad_in - in_f), (0, 0)))
    b_fused = b * scale + shift
    return w_fold.astype(jnp.bfloat16), b_fused.astype(jnp.float32), \
        shift.astype(jnp.float32)


def make_final_layer(klin, in_f, out_f, gamma, init, size):
    """Final quantized linear, zero-padded to LANE output columns; padded bias
    columns poisoned to -1e30 (so no in-kernel mask, no -inf arithmetic)."""
    w_t, b = make_linear_params(klin, in_f, out_f, gamma, init, size)
    w_pad = jnp.zeros((in_f, LANE), jnp.float32).at[:, :out_f].set(w_t)
    b_pad = jnp.full((LANE,), -1e30, jnp.float32).at[:out_f].set(b)
    return w_pad.astype(jnp.bfloat16), b_pad


def make_params(key, in_f, units, out_f, gamma, init, size):
    keys = jax.random.split(key, 7)
    w1, b1, h1 = make_hidden_layer(keys[0], keys[1], in_f, units,
                                   gamma, init, size, pad_in=IN_PAD)
    w2, b2, h2 = make_hidden_layer(keys[2], keys[3], units, units,
                                   gamma, init, size)
    w3, b3, h3 = make_hidden_layer(keys[4], keys[5], units, units,
                                   gamma, init, size)
    w4, b4 = make_final_layer(keys[6], units, out_f, gamma, init, size)
    # Pack every bias/shift row into a single (8, 128) f32 operand.
    bias = jnp.zeros((8, LANE), jnp.float32)
    bias = bias.at[0].set(b1).at[1].set(h1)
    bias = bias.at[2].set(b2).at[3].set(h2)
    bias = bias.at[4].set(b3).at[5].set(h3)
    bias = bias.at[6].set(b4)
    return (w1, w2, w3, w4, bias)


# ------------------------------ JAX reference -------------------------------

def reference_forward(x, params, out_features):
    """Plain-JAX mirror of the kernel math (bf16 operands, f32 accumulation)."""
    w1, w2, w3, w4, bias = params
    in_pad = w1.shape[0]
    xp = jnp.pad(x, ((0, 0), (0, in_pad - x.shape[1])))
    h = xp.astype(jnp.bfloat16).astype(jnp.float32)
    for w, br, sr in ((w1, 0, 1), (w2, 2, 3), (w3, 4, 5)):
        y = h @ w.astype(jnp.float32)
        y = jnp.maximum(y + bias[br], bias[sr])
        h = y.astype(jnp.bfloat16).astype(jnp.float32)
    y = h @ w4.astype(jnp.float32) + bias[6]
    return jax.nn.log_softmax(y, axis=-1)[:, :out_features]


# ----------------------------------- main -----------------------------------

if __name__ == "__main__":
    # Small MNIST-style shapes (scaled down); B=384 exercises batch padding
    # (-> 512) and two grid steps of BLOCK_M=256.
    B, IN_F, UNITS, OUT_F = 384, 64, 128, 10
    GAMMA, INIT, SIZE = 2.0, 0.25, 5

    root = jax.random.PRNGKey(0)
    kparams, kx = jax.random.split(root)

    params = make_params(kparams, IN_F, UNITS, OUT_F, GAMMA, INIT, SIZE)
    x = jax.random.normal(kx, (B, IN_F), jnp.float32)

    fwd = jax.jit(functools.partial(quant_loss_mnist_log_forward,
                                    out_features=OUT_F))
    out = jax.block_until_ready(fwd(x, params))

    assert out.shape == (B, OUT_F)
    assert bool(jnp.all(jnp.isfinite(out)))

    # log-softmax rows should exponentiate-sum to ~1 (bf16 output tolerance)
    row_sums = jnp.exp(out).sum(axis=-1)
    assert bool(jnp.all(jnp.abs(row_sums - 1.0) < 3e-2))

    # tolerance check against a plain-JAX reference of the same math
    ref = reference_forward(x, params, OUT_F)
    max_err = float(jnp.max(jnp.abs(out - ref)))
    assert max_err < 5e-2, f"max abs diff vs reference {max_err}"

    print("KERNEL_OK")
</pallas_src>

<mosaic_0001>
module attributes {stable_mosaic.version = 11 : i64} {
  func.func @fused_mlp_kernel(%arg0: i32, %arg1: memref<256x128xf32, #tpu.memory_space<vmem>>, %arg2: memref<128x128xbf16, #tpu.memory_space<vmem>>, %arg3: memref<128x128xbf16, #tpu.memory_space<vmem>>, %arg4: memref<128x128xbf16, #tpu.memory_space<vmem>>, %arg5: memref<128x128xbf16, #tpu.memory_space<vmem>>, %arg6: memref<8x128xf32, #tpu.memory_space<vmem>>, %arg7: memref<256x128xbf16, #tpu.memory_space<vmem>>) attributes {dimension_semantics = [#tpu.dimension_semantics<parallel>], iteration_bounds = array<i64: 2>, scalar_prefetch = 0 : i64, scratch_operands = 0 : i64, tpu.core_type = #tpu.core_type<tc>, window_params = [{transform_indices = @transform_0, window_bounds = array<i64: 256, 128>}, {pipeline_mode = #tpu.pipeline_mode<synchronous>, transform_indices = @transform_1, window_bounds = array<i64: 128, 128>}, {pipeline_mode = #tpu.pipeline_mode<synchronous>, transform_indices = @transform_2, window_bounds = array<i64: 128, 128>}, {pipeline_mode = #tpu.pipeline_mode<synchronous>, transform_indices = @transform_3, window_bounds = array<i64: 128, 128>}, {pipeline_mode = #tpu.pipeline_mode<synchronous>, transform_indices = @transform_4, window_bounds = array<i64: 128, 128>}, {pipeline_mode = #tpu.pipeline_mode<synchronous>, transform_indices = @transform_5, window_bounds = array<i64: 8, 128>}, {transform_indices = @transform_6, window_bounds = array<i64: 256, 128>}]} {
    %c0 = arith.constant 0 : index
    %c0_0 = arith.constant 0 : index
    %0 = vector.load %arg1[%c0, %c0_0] : memref<256x128xf32, #tpu.memory_space<vmem>>, vector<256x128xf32>
    %1 = arith.truncf %0 : vector<256x128xf32> to vector<256x128xbf16>
    %c0_1 = arith.constant 0 : index
    %c0_2 = arith.constant 0 : index
    %2 = vector.load %arg2[%c0_1, %c0_2] : memref<128x128xbf16, #tpu.memory_space<vmem>>, vector<128x128xbf16>
    %cst = arith.constant dense<0.000000e+00> : vector<256x128xf32>
    %3 = tpu.matmul %1, %2, %cst {dimension_numbers = #tpu.dot_dimension_numbers<[1], [0], [0], [1], [0, 0, 1, 1], [], []>} : vector<256x128xbf16>, vector<128x128xbf16>, vector<256x128xf32> -> vector<256x128xf32>
    %c0_3 = arith.constant 0 : index
    %c0_4 = arith.constant 0 : index
    %4 = vector.load %arg6[%c0_3, %c0_4] : memref<8x128xf32, #tpu.memory_space<vmem>>, vector<1x128xf32>
    %5 = vector.broadcast %4 : vector<1x128xf32> to vector<256x128xf32>
    %6 = arith.addf %3, %5 : vector<256x128xf32>
    %c1 = arith.constant 1 : index
    %c0_5 = arith.constant 0 : index
    %7 = vector.load %arg6[%c1, %c0_5] : memref<8x128xf32, #tpu.memory_space<vmem>>, vector<1x128xf32>
    %8 = vector.broadcast %7 : vector<1x128xf32> to vector<256x128xf32>
    %9 = arith.maximumf %6, %8 : vector<256x128xf32>
    %10 = arith.truncf %9 : vector<256x128xf32> to vector<256x128xbf16>
    %c0_6 = arith.constant 0 : index
    %c0_7 = arith.constant 0 : index
    %11 = vector.load %arg3[%c0_6, %c0_7] : memref<128x128xbf16, #tpu.memory_space<vmem>>, vector<128x128xbf16>
    %cst_8 = arith.constant dense<0.000000e+00> : vector<256x128xf32>
    %12 = tpu.matmul %10, %11, %cst_8 {dimension_numbers = #tpu.dot_dimension_numbers<[1], [0], [0], [1], [0, 0, 1, 1], [], []>} : vector<256x128xbf16>, vector<128x128xbf16>, vector<256x128xf32> -> vector<256x128xf32>
    %c2 = arith.constant 2 : index
    %c0_9 = arith.constant 0 : index
    %13 = vector.load %arg6[%c2, %c0_9] : memref<8x128xf32, #tpu.memory_space<vmem>>, vector<1x128xf32>
    %14 = vector.broadcast %13 : vector<1x128xf32> to vector<256x128xf32>
    %15 = arith.addf %12, %14 : vector<256x128xf32>
    %c3 = arith.constant 3 : index
    %c0_10 = arith.constant 0 : index
    %16 = vector.load %arg6[%c3, %c0_10] : memref<8x128xf32, #tpu.memory_space<vmem>>, vector<1x128xf32>
    %17 = vector.broadcast %16 : vector<1x128xf32> to vector<256x128xf32>
    %18 = arith.maximumf %15, %17 : vector<256x128xf32>
    %19 = arith.truncf %18 : vector<256x128xf32> to vector<256x128xbf16>
    %c0_11 = arith.constant 0 : index
    %c0_12 = arith.constant 0 : index
    %20 = vector.load %arg4[%c0_11, %c0_12] : memref<128x128xbf16, #tpu.memory_space<vmem>>, vector<128x128xbf16>
    %cst_13 = arith.constant dense<0.000000e+00> : vector<256x128xf32>
    %21 = tpu.matmul %19, %20, %cst_13 {dimension_numbers = #tpu.dot_dimension_numbers<[1], [0], [0], [1], [0, 0, 1, 1], [], []>} : vector<256x128xbf16>, vector<128x128xbf16>, vector<256x128xf32> -> vector<256x128xf32>
    %c4 = arith.constant 4 : index
    %c0_14 = arith.constant 0 : index
    %22 = vector.load %arg6[%c4, %c0_14] : memref<8x128xf32, #tpu.memory_space<vmem>>, vector<1x128xf32>
    %23 = vector.broadcast %22 : vector<1x128xf32> to vector<256x128xf32>
    %24 = arith.addf %21, %23 : vector<256x128xf32>
    %c5 = arith.constant 5 : index
    %c0_15 = arith.constant 0 : index
    %25 = vector.load %arg6[%c5, %c0_15] : memref<8x128xf32, #tpu.memory_space<vmem>>, vector<1x128xf32>
    %26 = vector.broadcast %25 : vector<1x128xf32> to vector<256x128xf32>
    %27 = arith.maximumf %24, %26 : vector<256x128xf32>
    %28 = arith.truncf %27 : vector<256x128xf32> to vector<256x128xbf16>
    %c0_16 = arith.constant 0 : index
    %c0_17 = arith.constant 0 : index
    %29 = vector.load %arg5[%c0_16, %c0_17] : memref<128x128xbf16, #tpu.memory_space<vmem>>, vector<128x128xbf16>
    %cst_18 = arith.constant dense<0.000000e+00> : vector<256x128xf32>
    %30 = tpu.matmul %28, %29, %cst_18 {dimension_numbers = #tpu.dot_dimension_numbers<[1], [0], [0], [1], [0, 0, 1, 1], [], []>} : vector<256x128xbf16>, vector<128x128xbf16>, vector<256x128xf32> -> vector<256x128xf32>
    %c6 = arith.constant 6 : index
    %c0_19 = arith.constant 0 : index
    %31 = vector.load %arg6[%c6, %c0_19] : memref<8x128xf32, #tpu.memory_space<vmem>>, vector<1x128xf32>
    %32 = vector.broadcast %31 : vector<1x128xf32> to vector<256x128xf32>
    %33 = arith.addf %30, %32 : vector<256x128xf32>
    %cst_20 = arith.constant dense<0xFF800000> : vector<256xf32>
    %34 = vector.multi_reduction <maximumf>, %33, %cst_20 [1] : vector<256x128xf32> to vector<256xf32>
    %35 = vector.shape_cast %34 : vector<256xf32> to vector<256x1xf32>
    %36 = vector.broadcast %35 : vector<256x1xf32> to vector<256x128xf32>
    %37 = arith.subf %33, %36 : vector<256x128xf32>
    %38 = math.exp %37 : vector<256x128xf32>
    %cst_21 = arith.constant dense<0.000000e+00> : vector<256xf32>
    %39 = vector.multi_reduction <add>, %38, %cst_21 [1] : vector<256x128xf32> to vector<256xf32>
    %40 = vector.shape_cast %39 : vector<256xf32> to vector<256x1xf32>
    %41 = math.log %40 : vector<256x1xf32>
    %42 = vector.broadcast %41 : vector<256x1xf32> to vector<256x128xf32>
    %43 = arith.subf %37, %42 : vector<256x128xf32>
    %44 = arith.truncf %43 : vector<256x128xf32> to vector<256x128xbf16>
    %c0_22 = arith.constant 0 : index
    %c0_23 = arith.constant 0 : index
    %45 = vector.load %arg7[%c0_22, %c0_23] : memref<256x128xbf16, #tpu.memory_space<vmem>>, vector<256x128xbf16>
    tpu.vector_store %arg7[%c0_22, %c0_23], %44 {strides = array<i32>} : memref<256x128xbf16, #tpu.memory_space<vmem>>, vector<256x128xbf16>,
    return
  }
  func.func @transform_0(%arg0: i32) -> (i32, i32) {
    %c0_i32 = arith.constant 0 : i32
    %c0_i32_0 = arith.constant 0 : i32
    return %arg0, %c0_i32 : i32, i32
  }
  func.func @transform_1(%arg0: i32) -> (i32, i32) {
    %c0_i32 = arith.constant 0 : i32
    %c0_i32_0 = arith.constant 0 : i32
    %c0_i32_1 = arith.constant 0 : i32
    return %c0_i32, %c0_i32_0 : i32, i32
  }
  func.func @transform_2(%arg0: i32) -> (i32, i32) {
    %c0_i32 = arith.constant 0 : i32
    %c0_i32_0 = arith.constant 0 : i32
    %c0_i32_1 = arith.constant 0 : i32
    return %c0_i32, %c0_i32_0 : i32, i32
  }
  func.func @transform_3(%arg0: i32) -> (i32, i32) {
    %c0_i32 = arith.constant 0 : i32
    %c0_i32_0 = arith.constant 0 : i32
    %c0_i32_1 = arith.constant 0 : i32
    return %c0_i32, %c0_i32_0 : i32, i32
  }
  func.func @transform_4(%arg0: i32) -> (i32, i32) {
    %c0_i32 = arith.constant 0 : i32
    %c0_i32_0 = arith.constant 0 : i32
    %c0_i32_1 = arith.constant 0 : i32
    return %c0_i32, %c0_i32_0 : i32, i32
  }
  func.func @transform_5(%arg0: i32) -> (i32, i32) {
    %c0_i32 = arith.constant 0 : i32
    %c0_i32_0 = arith.constant 0 : i32
    %c0_i32_1 = arith.constant 0 : i32
    return %c0_i32, %c0_i32_0 : i32, i32
  }
  func.func @transform_6(%arg0: i32) -> (i32, i32) {
    %c0_i32 = arith.constant 0 : i32
    %c0_i32_0 = arith.constant 0 : i32
    return %arg0, %c0_i32 : i32, i32
  }
}

</mosaic_0001>

<bundles_post_ra>
// kernel: quant_loss_mnist_log_forward.1
= control target key start
LH: loop header
LB: loop body
LE: loop exit
PB: predicated region body
PF: predicated region fallthrough
CT: control target
= control target key end

     0   :  { %s2627_s21 = smov 0   ;;  %s3311_s0 = inlined_call_operand.vmem [shape: f32[512,128], index: 0, kind: input, shape index: {}]   ;;  %s3312_s1 = inlined_call_operand.vmem [shape: bf16[128,128], index: 1, kind: input, shape index: {}]   ;;  %s3313_s2 = inlined_call_operand.vmem [shape: bf16[128,128], index: 2, kind: input, shape index: {}]   ;;  %s3314_s3 = inlined_call_operand.vmem [shape: bf16[128,128], index: 3, kind: input, shape index: {}]   ;;  %s3315_s4 = inlined_call_operand.vmem [shape: bf16[128,128], index: 4, kind: input, shape index: {}]   ;;  %s3316_s5 = inlined_call_operand.vmem [shape: f32[8,128], index: 5, kind: input, shape index: {}]   ;;  %s3317_s6 = inlined_call_operand.vmem [shape: bf16[512,128], index: 6, kind: output, shape index: {}]  }
   0x1 LB: > { %s1919_s22 = sadd.s32 4294967295, %s2590_s21   ;;  %p1923_p0 = scmp.ge.s32.totalorder %s2590_s21, 1  ;;  %s2590_s21 = sphi %s2627_s21, %s16_s21  }
   0x2   : > { %p213_p1 = scmp.lt.s32.totalorder %s2590_s21, 3 }
   0x4   : > { %p214_p2 = pnand %p1923_p0, %p213_p1 }
   0x5   : > { %s1924_s25 = sshll.u32 (!%p214_p2), %s1919_s22, 5 }
   0x6   : > { %217 = sbr.rel (%p214_p2) target bundleno = 1238 (0x4d6), region = 44  ;;  %p244_p3 = scmp.lt.s32.totalorder (!%p214_p2), %s1924_s25, 63 }
   0xb   : > { %v2424_v0 = vld [vmem:[%s3312_s1 + $0x38] sm:$0xff]   ;;  %v2425_v1 = vld [vmem:[%s3312_s1 + $0x30] sm:$0xff]   ;;  %s3319_s25 = smov (!%p244_p3, %s1924_s25), 63  ;;  %v2426_v2 = vld [vmem:[%s3312_s1 + $0x28] sm:$0xff]  }
   0xc   : > { %2224 = vmatprep.subr.bf16.mxu0 %v2424_v0  ;;  %s1925_s30 = sshll.u32 %s3319_s25, 3  ;;  %v2427_v3 = vld [vmem:[%s3312_s1 + $0x20] sm:$0xff]   ;;  %v2428_v7 = vld [vmem:[%s3312_s1 + $0x18] sm:$0xff]   ;;  %v2429_v8 = vld [vmem:[%s3312_s1 + $0x10] sm:$0xff]   ;;  %s1927_s16 = sshll.u32 %s3319_s25, 2 }
   0xd   : > { %2225 = vmatpush3.bf16.msra.mxu0 %v2424_v0  ;;  %s2650_s9 = scalar_lea.vmem %s3311_s0, %s1925_s30  ;;  %v2430_v9 = vld [vmem:[%s3312_s1 + $0x8] sm:$0xff]   ;;  %v2432_v10 = vld [vmem:[%s3313_s2 + $0x38] sm:$0xff]   ;;  %v2433_v11 = vld [vmem:[%s3313_s2 + $0x30] sm:$0xff]   ;;  %s3260_s19 = scalar_lea.vmem %s3317_s6, %s1927_s16 }
   0xe   : > { %2226 = vmatprep.subr.bf16.mxu0 %v2425_v1  ;;  %v256_v4 = vld [vmem:[%s2650_s9] sm:$0xff]  ;;  %v257_v5 = vld [vmem:[%s2650_s9 + $0x8] sm:$0xff]  ;;  %2272 = vmatprep.subr.bf16.mxu1 %v2432_v10  ;;  %v258_v14 = vld [vmem:[%s2650_s9 + $0x10] sm:$0xff] }
   0xf   : > { %v288_v6 = vpack.c.bf16 %v257_v5, %v256_v4  ;;  %v2431_v12 = vld [vmem:[%s3312_s1] sm:$0xff]   ;;  %2273 = vmatpush3.bf16.msra.mxu1 %v2432_v10  ;;  %v2434_v13 = vld [vmem:[%s3313_s2 + $0x28] sm:$0xff]   ;;  %v259_v15 = vld [vmem:[%s2650_s9 + $0x18] sm:$0xff] }
  0x10   : > { %2274 = vmatprep.subr.bf16.mxu1 %v2433_v11  ;;  %v2435_v16 = vld [vmem:[%s3313_s2 + $0x20] sm:$0xff]   ;;  %v261_v18 = vld [vmem:[%s2650_s9 + $0x28] sm:$0xff]  ;;  %v2436_v19 = vld [vmem:[%s3313_s2 + $0x18] sm:$0xff]   ;;  %v289_v20 = vpack.c.bf16 %v259_v15, %v258_v14 }
  0x11   : > { %2227 = vmatpush3.bf16.msra.mxu0 %v2425_v1  ;;  %2240 = vmatprep.mubr.bf16.mxu0 %v288_v6  ;;  %v260_v17 = vld [vmem:[%s2650_s9 + $0x20] sm:$0xff]  ;;  %v262_v22 = vld [vmem:[%s2650_s9 + $0x30] sm:$0xff]  ;;  %v263_v23 = vld [vmem:[%s2650_s9 + $0x38] sm:$0xff] }
  0x12   : > { %2228 = vmatprep.subr.bf16.mxu0 %v2426_v2  ;;  %v290_v21 = vpack.c.bf16 %v261_v18, %v260_v17  ;;  %v264_v24 = vld [vmem:[%s2650_s9 + $0x40] sm:$0xff]  ;;  %v265_v25 = vld [vmem:[%s2650_s9 + $0x48] sm:$0xff]  ;;  %v291_v26 = vpack.c.bf16 %v263_v23, %v262_v22  ;;  %v266_v28 = vld [vmem:[%s2650_s9 + $0x50] sm:$0xff] }
  0x13   : > { %2275 = vmatpush3.bf16.msra.mxu1 %v2433_v11  ;;  %v292_v27 = vpack.c.bf16 %v265_v25, %v264_v24  ;;  %v267_v29 = vld [vmem:[%s2650_s9 + $0x58] sm:$0xff]  ;;  %v268_v30 = vld [vmem:[%s2650_s9 + $0x60] sm:$0xff]  ;;  %v269_v31 = vld [vmem:[%s2650_s9 + $0x68] sm:$0xff] }
  0x14   : > { %2276 = vmatprep.subr.bf16.mxu1 %v2434_v13  ;;  %v293_v32 = vpack.c.bf16 %v267_v29, %v266_v28  ;;  %v294_v33 = vpack.c.bf16 %v269_v31, %v268_v30  ;;  %v270_v34 = vld [vmem:[%s2650_s9 + $0x70] sm:$0xff]  ;;  %v271_v35 = vld [vmem:[%s2650_s9 + $0x78] sm:$0xff]  ;;  %v272_v36 = vld [vmem:[%s2650_s9 + $0x80] sm:$0xff] }
  0x15   : > { %2229 = vmatpush3.bf16.msra.mxu0 %v2426_v2  ;;  %v273_v37 = vld [vmem:[%s2650_s9 + $0x88] sm:$0xff]  ;;  %v295_v38 = vpack.c.bf16 %v271_v35, %v270_v34  ;;  %v274_v40 = vld [vmem:[%s2650_s9 + $0x90] sm:$0xff]  ;;  %v275_v41 = vld [vmem:[%s2650_s9 + $0x98] sm:$0xff] }
  0x16   : > { %2230 = vmatprep.subr.bf16.mxu0 %v2427_v3  ;;  %v296_v39 = vpack.c.bf16 %v273_v37, %v272_v36  ;;  %v276_v42 = vld [vmem:[%s2650_s9 + $0xa0] sm:$0xff]  ;;  %v277_v43 = vld [vmem:[%s2650_s9 + $0xa8] sm:$0xff]  ;;  %v297_v44 = vpack.c.bf16 %v275_v41, %v274_v40  ;;  %v278_v46 = vld [vmem:[%s2650_s9 + $0xb0] sm:$0xff] }
  0x17   : > { %2277 = vmatpush3.bf16.msra.mxu1 %v2434_v13  ;;  %v298_v45 = vpack.c.bf16 %v277_v43, %v276_v42  ;;  %v279_v47 = vld [vmem:[%s2650_s9 + $0xb8] sm:$0xff]  ;;  %v280_v48 = vld [vmem:[%s2650_s9 + $0xc0] sm:$0xff]  ;;  %v281_v49 = vld [vmem:[%s2650_s9 + $0xc8] sm:$0xff] }
  0x18   : > { %2278 = vmatprep.subr.bf16.mxu1 %v2435_v16  ;;  %v299_v50 = vpack.c.bf16 %v279_v47, %v278_v46  ;;  %v300_v51 = vpack.c.bf16 %v281_v49, %v280_v48  ;;  %v282_v52 = vld [vmem:[%s2650_s9 + $0xd0] sm:$0xff]  ;;  %v283_v53 = vld [vmem:[%s2650_s9 + $0xd8] sm:$0xff]  ;;  %v284_v54 = vld [vmem:[%s2650_s9 + $0xe0] sm:$0xff] }
  0x19   : > { %2231 = vmatpush3.bf16.msra.mxu0 %v2427_v3  ;;  %v285_v55 = vld [vmem:[%s2650_s9 + $0xe8] sm:$0xff]  ;;  %v301_v56 = vpack.c.bf16 %v283_v53, %v282_v52  ;;  %v286_v58 = vld [vmem:[%s2650_s9 + $0xf0] sm:$0xff]  ;;  %v287_v59 = vld [vmem:[%s2650_s9 + $0xf8] sm:$0xff] }
  0x1a   : > { %2232 = vmatprep.subr.bf16.mxu0 %v2428_v7  ;;  %v302_v57 = vpack.c.bf16 %v285_v55, %v284_v54  ;;  %v303_v60 = vpack.c.bf16 %v287_v59, %v286_v58  ;;  %v2437_v61 = vld [vmem:[%s3313_s2 + $0x10] sm:$0xff]   ;;  %v2438_v62 = vld [vmem:[%s3313_s2 + $0x8] sm:$0xff]   ;;  %v2439_v63 = vld [vmem:[%s3313_s2] sm:$0xff]  }
  0x1b   : > { %2279 = vmatpush3.bf16.msra.mxu1 %v2435_v16  ;;  %v2440_v0 = vld [vmem:[%s3314_s3 + $0x38] sm:$0xff]   ;;  %v2441_v1 = vld [vmem:[%s3314_s3 + $0x30] sm:$0xff]   ;;  %v2442_v2 = vld [vmem:[%s3314_s3 + $0x28] sm:$0xff]  }
  0x1c   : > { %2280 = vmatprep.subr.bf16.mxu1 %v2436_v19  ;;  %v2443_v3 = vld [vmem:[%s3314_s3 + $0x20] sm:$0xff]   ;;  %v2444_v4 = vld [vmem:[%s3314_s3 + $0x18] sm:$0xff]   ;;  %v2445_v5 = vld [vmem:[%s3314_s3 + $0x10] sm:$0xff]  }
  0x1d   : > { %2233 = vmatpush3.bf16.msra.mxu0 %v2428_v7  ;;  %v2446_v6 = vld [vmem:[%s3314_s3 + $0x8] sm:$0xff]   ;;  %v2755_v15 = vld [vmem:[%s3316_s5 + $0x1] ss:$0 sm:$0xff] }
  0x1e   : > { %2234 = vmatprep.subr.bf16.mxu0 %v2429_v8 }
  0x1f   : > { %2281 = vmatpush3.bf16.msra.mxu1 %v2436_v19 }
  0x20   : > { %2282 = vmatprep.subr.bf16.mxu1 %v2437_v61 }
  0x21   : > { %2235 = vmatpush3.bf16.msra.mxu0 %v2429_v8 }
  0x22   : > { %2236 = vmatprep.subr.bf16.mxu0 %v2430_v9 }
  0x23   : > { %2283 = vmatpush3.bf16.msra.mxu1 %v2437_v61 }
  0x24   : > { %2284 = vmatprep.subr.bf16.mxu1 %v2438_v62 }
  0x25   : > { %2237 = vmatpush3.bf16.msra.mxu0 %v2430_v9  ;;  %v2747_v9 = vld [vmem:[%s3316_s5] ss:$0 sm:$0xff] }
  0x26   : > { %2238 = vmatprep.subr.bf16.mxu0 %v2431_v12 }
  0x27   : > { %2285 = vmatpush3.bf16.msra.mxu1 %v2438_v62 }
  0x28   : > { %2286 = vmatprep.subr.bf16.mxu1 %v2439_v63 }
  0x29   : > { %2239 = vmatpush3.bf16.msra.mxu0 %v2431_v12 }
  0x2a   : > { %2320 = vmatprep.subr.bf16.mxu0 %v2440_v0 }
  0x2b   : > { %2287 = vmatpush3.bf16.msra.mxu1 %v2439_v63 }
  0x2c   : > { %2241 = vmatmul.mubr.bf16.vlgmr.msra.gmra.mxu0 %v289_v20 }
  0x2d   : > { %2244 = vmatprep.mubr.bf16.mxu0 %v290_v21  ;;  %2321 = vmatpush3.bf16.msra.mxu0 %v2440_v0 }
  0x2e   : > { %2322 = vmatprep.subr.bf16.mxu0 %v2441_v1 }
  0x31   : > { %2323 = vmatpush3.bf16.msra.mxu0 %v2441_v1 }
  0x32   : > { %2324 = vmatprep.subr.bf16.mxu0 %v2442_v2 }
  0x34   : > { %2245 = vmatmul.mubr.bf16.gmra.mxu0 %v291_v26 }
  0x35   : > { %2248 = vmatprep.mubr.bf16.mxu0 %v292_v27  ;;  %2325 = vmatpush3.bf16.msra.mxu0 %v2442_v2 }
  0x36   : > { %2326 = vmatprep.subr.bf16.mxu0 %v2443_v3 }
  0x39   : > { %2327 = vmatpush3.bf16.msra.mxu0 %v2443_v3 }
  0x3a   : > { %2328 = vmatprep.subr.bf16.mxu0 %v2444_v4 }
  0x3c   : > { %2249 = vmatmul.mubr.bf16.gmra.mxu0 %v293_v32 }
  0x3d   : > { %2252 = vmatprep.mubr.bf16.mxu0 %v294_v33  ;;  %2329 = vmatpush3.bf16.msra.mxu0 %v2444_v4 }
  0x3e   : > { %2330 = vmatprep.subr.bf16.mxu0 %v2445_v5 }
  0x41   : > { %2331 = vmatpush3.bf16.msra.mxu0 %v2445_v5 }
  0x42   : > { %2332 = vmatprep.subr.bf16.mxu0 %v2446_v6 }
  0x44   : > { %2253 = vmatmul.mubr.bf16.gmra.mxu0 %v295_v38 }
  0x45   : > { %2256 = vmatprep.mubr.bf16.mxu0 %v296_v39  ;;  %2333 = vmatpush3.bf16.msra.mxu0 %v2446_v6 }
  0x4c   : > { %2257 = vmatmul.mubr.bf16.gmra.mxu0 %v297_v44 }
  0x4d   : > { %2260 = vmatprep.mubr.bf16.mxu0 %v298_v45 }
  0x54   : > { %2261 = vmatmul.mubr.bf16.gmra.mxu0 %v299_v50 }
  0x55   : > { %2264 = vmatprep.mubr.bf16.mxu0 %v300_v51 }
  0x5c   : > { %2265 = vmatmul.mubr.bf16.gmra.mxu0 %v301_v56 }
  0x5d   : > { %2268 = vmatprep.mubr.bf16.mxu0 %v302_v57 }
  0x64   : > { %2269 = vmatmul.mubr.bf16.gmra.mxu0 %v303_v60 }
  0xec   : > { %v2242_v7 = vpop.f32.mrf.mxu0 }
  0xed   : > { %v416_v13 = vadd.f32 %v2242_v7, %v2747_v9 }
  0xee   : > { %v407_v8 = vpop.f32.mrf.mxu0 }
  0xef   : > { %v408_v11 = vadd.f32 %v2747_v9, %v407_v8  ;;  %v541_v21 = vmax.f32 %v416_v13, %v2755_v15 }
  0xf0   : > { %v2243_v10 = vpop.f32.mrf.mxu0 }
  0xf1   : > { %v419_v12 = vadd.f32 %v2243_v10, %v2747_v9  ;;  %v539_v19 = vmax.f32 %v408_v11, %v2755_v15 }
  0xf2   : > { %v410_v14 = vpop.f32.mrf.mxu0 }
  0xf3   : > { %v411_v16 = vadd.f32 %v2747_v9, %v410_v14  ;;  %v542_v17 = vmax.f32 %v419_v12, %v2755_v15 }
  0xf4   : > { %v2246_v18 = vpop.f32.mrf.mxu0 }
  0xf5   : > { %v540_v20 = vmax.f32 %v411_v16, %v2755_v15  ;;  %v572_v25 = vpack.c.bf16 %v542_v17, %v541_v21  ;;  %v432_v28 = vadd.f32 %v2246_v18, %v2747_v9 }
  0xf6   : > { %v423_v22 = vpop.f32.mrf.mxu0 }
  0xf7   : > { %v571_v23 = vpack.c.bf16 %v540_v20, %v539_v19  ;;  %v424_v26 = vadd.f32 %v2747_v9, %v423_v22  ;;  %v545_v35 = vmax.f32 %v432_v28, %v2755_v15 }
  0xf8   : > { %v2247_v24 = vpop.f32.mrf.mxu0 }
  0xf9   : > { %v435_v27 = vadd.f32 %v2247_v24, %v2747_v9  ;;  %2288 = vmatprep.mubr.bf16.mxu1 %v571_v23  ;;  %v543_v33 = vmax.f32 %v424_v26, %v2755_v15 }
  0xfa   : > { %v426_v29 = vpop.f32.mrf.mxu0  ;;  %2289 = vmatmul.mubr.bf16.vlgmr.msra.gmra.mxu1 %v572_v25 }
  0xfb   : > { %v427_v30 = vadd.f32 %v2747_v9, %v426_v29  ;;  %v546_v31 = vmax.f32 %v435_v27, %v2755_v15 }
  0xfc   : > { %v2250_v32 = vpop.f32.mrf.mxu0 }
  0xfd   : > { %v544_v34 = vmax.f32 %v427_v30, %v2755_v15  ;;  %v574_v39 = vpack.c.bf16 %v546_v31, %v545_v35  ;;  %v448_v42 = vadd.f32 %v2250_v32, %v2747_v9 }
  0xfe   : > { %v439_v36 = vpop.f32.mrf.mxu0 }
  0xff   : > { %v573_v37 = vpack.c.bf16 %v544_v34, %v543_v33  ;;  %v440_v40 = vadd.f32 %v2747_v9, %v439_v36  ;;  %v549_v49 = vmax.f32 %v448_v42, %v2755_v15 }
 0x100   : > { %v2251_v38 = vpop.f32.mrf.mxu0 }
 0x101   : > { %v451_v41 = vadd.f32 %v2251_v38, %v2747_v9  ;;  %2292 = vmatprep.mubr.bf16.mxu1 %v573_v37  ;;  %v547_v47 = vmax.f32 %v440_v40, %v2755_v15 }
 0x102   : > { %v442_v43 = vpop.f32.mrf.mxu0  ;;  %2293 = vmatmul.mubr.bf16.gmra.mxu1 %v574_v39 }
 0x103   : > { %v443_v44 = vadd.f32 %v2747_v9, %v442_v43  ;;  %v550_v45 = vmax.f32 %v451_v41, %v2755_v15 }
 0x104   : > { %v2254_v46 = vpop.f32.mrf.mxu0 }
 0x105   : > { %v548_v48 = vmax.f32 %v443_v44, %v2755_v15  ;;  %v576_v53 = vpack.c.bf16 %v550_v45, %v549_v49  ;;  %v464_v56 = vadd.f32 %v2254_v46, %v2747_v9 }
 0x106   : > { %v455_v50 = vpop.f32.mrf.mxu0 }
 0x107   : > { %v575_v51 = vpack.c.bf16 %v548_v48, %v547_v47  ;;  %v456_v54 = vadd.f32 %v2747_v9, %v455_v50  ;;  %v553_v63 = vmax.f32 %v464_v56, %v2755_v15 }
 0x108   : > { %v2255_v52 = vpop.f32.mrf.mxu0 }
 0x109   : > { %v467_v55 = vadd.f32 %v2255_v52, %v2747_v9  ;;  %2296 = vmatprep.mubr.bf16.mxu1 %v575_v51  ;;  %v551_v61 = vmax.f32 %v456_v54, %v2755_v15 }
 0x10a   : > { %v458_v57 = vpop.f32.mrf.mxu0  ;;  %2297 = vmatmul.mubr.bf16.gmra.mxu1 %v576_v53 }
 0x10b   : > { %v459_v58 = vadd.f32 %v2747_v9, %v458_v57  ;;  %v554_v59 = vmax.f32 %v467_v55, %v2755_v15 }
 0x10c   : > { %v2258_v60 = vpop.f32.mrf.mxu0 }
 0x10d   : > { %v552_v62 = vmax.f32 %v459_v58, %v2755_v15  ;;  %v578_v3 = vpack.c.bf16 %v554_v59, %v553_v63  ;;  %v480_v6 = vadd.f32 %v2258_v60, %v2747_v9  ;;  %v2447_v59 = vld [vmem:[%s3314_s3] sm:$0xff]   ;;  %v2449_v60 = vld [vmem:[%s3315_s4 + $0x30] sm:$0xff]  }
 0x10e   : > { %v471_v0 = vpop.f32.mrf.mxu0  ;;  %2334 = vmatprep.subr.bf16.mxu0 %v2447_v59  ;;  %v2453_v63 = vld [vmem:[%s3315_s4 + $0x10] sm:$0xff]  }
 0x10f   : > { %v577_v1 = vpack.c.bf16 %v552_v62, %v551_v61  ;;  %v472_v4 = vadd.f32 %v2747_v9, %v471_v0  ;;  %v557_v14 = vmax.f32 %v480_v6, %v2755_v15  ;;  %2335 = vmatpush3.bf16.msra.mxu0 %v2447_v59  ;;  %v2451_v61 = vld [vmem:[%s3315_s4 + $0x20] sm:$0xff]   ;;  %v2452_v62 = vld [vmem:[%s3315_s4 + $0x18] sm:$0xff]   ;;  %v2454_v0 = vld [vmem:[%s3315_s4 + $0x8] sm:$0xff]  }
 0x110   : > { %v2259_v2 = vpop.f32.mrf.mxu0 }
 0x111   : > { %v483_v5 = vadd.f32 %v2259_v2, %v2747_v9  ;;  %2300 = vmatprep.mubr.bf16.mxu1 %v577_v1  ;;  %v555_v12 = vmax.f32 %v472_v4, %v2755_v15 }
 0x112   : > { %v474_v7 = vpop.f32.mrf.mxu0  ;;  %2301 = vmatmul.mubr.bf16.gmra.mxu1 %v578_v3  ;;  %v2845_v3 = vld [vmem:[%s3316_s5 + $0x2] ss:$0 sm:$0xff] }
 0x113   : > { %v475_v8 = vadd.f32 %v2747_v9, %v474_v7  ;;  %v558_v10 = vmax.f32 %v483_v5, %v2755_v15 }
 0x114   : > { %v2262_v11 = vpop.f32.mrf.mxu0 }
 0x115   : > { %v556_v13 = vmax.f32 %v475_v8, %v2755_v15  ;;  %v580_v19 = vpack.c.bf16 %v558_v10, %v557_v14  ;;  %v496_v22 = vadd.f32 %v2262_v11, %v2747_v9  ;;  %v2853_v10 = vld [vmem:[%s3316_s5 + $0x3] ss:$0 sm:$0xff] }
 0x116   : > { %v487_v16 = vpop.f32.mrf.mxu0 }
 0x117   : > { %v579_v17 = vpack.c.bf16 %v556_v13, %v555_v12  ;;  %v488_v20 = vadd.f32 %v2747_v9, %v487_v16  ;;  %v561_v29 = vmax.f32 %v496_v22, %v2755_v15 }
 0x118   : > { %v2263_v18 = vpop.f32.mrf.mxu0 }
 0x119   : > { %v499_v21 = vadd.f32 %v2263_v18, %v2747_v9  ;;  %2304 = vmatprep.mubr.bf16.mxu1 %v579_v17  ;;  %v559_v27 = vmax.f32 %v488_v20, %v2755_v15 }
 0x11a   : > { %v490_v23 = vpop.f32.mrf.mxu0  ;;  %2305 = vmatmul.mubr.bf16.gmra.mxu1 %v580_v19 }
 0x11b   : > { %v491_v24 = vadd.f32 %v2747_v9, %v490_v23  ;;  %v562_v25 = vmax.f32 %v499_v21, %v2755_v15 }
 0x11c   : > { %v2266_v26 = vpop.f32.mrf.mxu0 }
 0x11d   : > { %v560_v28 = vmax.f32 %v491_v24, %v2755_v15  ;;  %v582_v33 = vpack.c.bf16 %v562_v25, %v561_v29  ;;  %v512_v36 = vadd.f32 %v2266_v26, %v2747_v9 }
 0x11e   : > { %v503_v30 = vpop.f32.mrf.mxu0 }
 0x11f   : > { %v581_v31 = vpack.c.bf16 %v560_v28, %v559_v27  ;;  %v504_v34 = vadd.f32 %v2747_v9, %v503_v30  ;;  %v565_v43 = vmax.f32 %v512_v36, %v2755_v15 }
 0x120   : > { %v2267_v32 = vpop.f32.mrf.mxu0 }
 0x121   : > { %v515_v35 = vadd.f32 %v2267_v32, %v2747_v9  ;;  %2308 = vmatprep.mubr.bf16.mxu1 %v581_v31  ;;  %v563_v41 = vmax.f32 %v504_v34, %v2755_v15 }
 0x122   : > { %v506_v37 = vpop.f32.mrf.mxu0  ;;  %2309 = vmatmul.mubr.bf16.gmra.mxu1 %v582_v33 }
 0x123   : > { %v507_v38 = vadd.f32 %v2747_v9, %v506_v37  ;;  %v566_v39 = vmax.f32 %v515_v35, %v2755_v15 }
 0x124   : > { %v2270_v40 = vpop.f32.mrf.mxu0 }
 0x125   : > { %v564_v42 = vmax.f32 %v507_v38, %v2755_v15  ;;  %v584_v47 = vpack.c.bf16 %v566_v39, %v565_v43  ;;  %v528_v50 = vadd.f32 %v2270_v40, %v2747_v9 }
 0x126   : > { %v519_v44 = vpop.f32.mrf.mxu0 }
 0x127   : > { %v583_v45 = vpack.c.bf16 %v564_v42, %v563_v41  ;;  %v520_v48 = vadd.f32 %v2747_v9, %v519_v44  ;;  %v569_v56 = vmax.f32 %v528_v50, %v2755_v15 }
 0x128   : > { %v2271_v46 = vpop.f32.mrf.mxu0 }
 0x129   : > { %v531_v49 = vadd.f32 %v2271_v46, %v2747_v9  ;;  %2312 = vmatprep.mubr.bf16.mxu1 %v583_v45  ;;  %v567_v54 = vmax.f32 %v520_v48, %v2755_v15 }
 0x12a   : > { %v522_v51 = vpop.f32.mrf.mxu0  ;;  %2313 = vmatmul.mubr.bf16.gmra.mxu1 %v584_v47 }
 0x12b   : > { %v523_v52 = vadd.f32 %v2747_v9, %v522_v51  ;;  %v570_v53 = vmax.f32 %v531_v49, %v2755_v15  ;;  %v2448_v9 = vld [vmem:[%s3315_s4 + $0x38] sm:$0xff]  }
 0x12c   : > { %2368 = vmatprep.subr.bf16.mxu1 %v2448_v9 }
 0x12d   : > { %v568_v55 = vmax.f32 %v523_v52, %v2755_v15  ;;  %v586_v58 = vpack.c.bf16 %v570_v53, %v569_v56  ;;  %2369 = vmatpush3.bf16.msra.mxu1 %v2448_v9  ;;  %v2450_v15 = vld [vmem:[%s3315_s4 + $0x28] sm:$0xff]  }
 0x12e   : > { %2370 = vmatprep.subr.bf16.mxu1 %v2449_v60 }
 0x12f   : > { %v585_v57 = vpack.c.bf16 %v568_v55, %v567_v54 }
 0x131   : > { %2316 = vmatprep.mubr.bf16.mxu1 %v585_v57  ;;  %2371 = vmatpush3.bf16.msra.mxu1 %v2449_v60 }
 0x132   : > { %2317 = vmatmul.mubr.bf16.gmra.mxu1 %v586_v58  ;;  %2372 = vmatprep.subr.bf16.mxu1 %v2450_v15 }
 0x135   : > { %2373 = vmatpush3.bf16.msra.mxu1 %v2450_v15 }
 0x136   : > { %2374 = vmatprep.subr.bf16.mxu1 %v2451_v61 }
 0x139   : > { %2375 = vmatpush3.bf16.msra.mxu1 %v2451_v61 }
 0x13a   : > { %2376 = vmatprep.subr.bf16.mxu1 %v2452_v62 }
 0x13d   : > { %2377 = vmatpush3.bf16.msra.mxu1 %v2452_v62 }
 0x13e   : > { %2378 = vmatprep.subr.bf16.mxu1 %v2453_v63 }
 0x141   : > { %2379 = vmatpush3.bf16.msra.mxu1 %v2453_v63 }
 0x142   : > { %2380 = vmatprep.subr.bf16.mxu1 %v2454_v0 }
 0x145   : > { %2381 = vmatpush3.bf16.msra.mxu1 %v2454_v0 }
 0x1ba   : > { %v2290_v1 = vpop.f32.mrf.mxu1 }
 0x1bb   : > { %v699_v7 = vadd.f32 %v2290_v1, %v2845_v3 }
 0x1bc   : > { %v690_v2 = vpop.f32.mrf.mxu1 }
 0x1bd   : > { %v691_v5 = vadd.f32 %v2845_v3, %v690_v2  ;;  %v824_v17 = vmax.f32 %v699_v7, %v2853_v10 }
 0x1be   : > { %v2291_v4 = vpop.f32.mrf.mxu1 }
 0x1bf   : > { %v702_v6 = vadd.f32 %v2291_v4, %v2845_v3  ;;  %v822_v14 = vmax.f32 %v691_v5, %v2853_v10 }
 0x1c0   : > { %v693_v8 = vpop.f32.mrf.mxu1 }
 0x1c1   : > { %v694_v11 = vadd.f32 %v2845_v3, %v693_v8  ;;  %v825_v12 = vmax.f32 %v702_v6, %v2853_v10 }
 0x1c2   : > { %v2294_v13 = vpop.f32.mrf.mxu1 }
 0x1c3   : > { %v823_v16 = vmax.f32 %v694_v11, %v2853_v10  ;;  %v855_v20 = vpack.c.bf16 %v825_v12, %v824_v17  ;;  %v715_v24 = vadd.f32 %v2294_v13, %v2845_v3 }
 0x1c4   : > { %v706_v18 = vpop.f32.mrf.mxu1 }
 0x1c5   : > { %v854_v19 = vpack.c.bf16 %v823_v16, %v822_v14  ;;  %v707_v22 = vadd.f32 %v2845_v3, %v706_v18  ;;  %v828_v31 = vmax.f32 %v715_v24, %v2853_v10 }
 0x1c6   : > { %v2295_v21 = vpop.f32.mrf.mxu1 }
 0x1c7   : > { %v718_v23 = vadd.f32 %v2295_v21, %v2845_v3  ;;  %2336 = vmatprep.mubr.bf16.mxu0 %v854_v19  ;;  %v826_v29 = vmax.f32 %v707_v22, %v2853_v10 }
 0x1c8   : > { %v709_v25 = vpop.f32.mrf.mxu1  ;;  %2337 = vmatmul.mubr.bf16.vlgmr.msra.gmra.mxu0 %v855_v20 }
 0x1c9   : > { %v710_v26 = vadd.f32 %v2845_v3, %v709_v25  ;;  %v829_v27 = vmax.f32 %v718_v23, %v2853_v10 }
 0x1ca   : > { %v2298_v28 = vpop.f32.mrf.mxu1 }
 0x1cb   : > { %v827_v30 = vmax.f32 %v710_v26, %v2853_v10  ;;  %v857_v35 = vpack.c.bf16 %v829_v27, %v828_v31  ;;  %v731_v38 = vadd.f32 %v2298_v28, %v2845_v3 }
 0x1cc   : > { %v722_v32 = vpop.f32.mrf.mxu1 }
 0x1cd   : > { %v856_v33 = vpack.c.bf16 %v827_v30, %v826_v29  ;;  %v723_v36 = vadd.f32 %v2845_v3, %v722_v32  ;;  %v832_v45 = vmax.f32 %v731_v38, %v2853_v10 }
 0x1ce   : > { %v2299_v34 = vpop.f32.mrf.mxu1 }
 0x1cf   : > { %v734_v37 = vadd.f32 %v2299_v34, %v2845_v3  ;;  %2340 = vmatprep.mubr.bf16.mxu0 %v856_v33  ;;  %v830_v43 = vmax.f32 %v723_v36, %v2853_v10 }
 0x1d0   : > { %v725_v39 = vpop.f32.mrf.mxu1  ;;  %2341 = vmatmul.mubr.bf16.gmra.mxu0 %v857_v35 }
 0x1d1   : > { %v726_v40 = vadd.f32 %v2845_v3, %v725_v39  ;;  %v833_v41 = vmax.f32 %v734_v37, %v2853_v10 }
 0x1d2   : > { %v2302_v42 = vpop.f32.mrf.mxu1 }
 0x1d3   : > { %v831_v44 = vmax.f32 %v726_v40, %v2853_v10  ;;  %v859_v49 = vpack.c.bf16 %v833_v41, %v832_v45  ;;  %v747_v52 = vadd.f32 %v2302_v42, %v2845_v3 }
 0x1d4   : > { %v738_v46 = vpop.f32.mrf.mxu1 }
 0x1d5   : > { %v858_v47 = vpack.c.bf16 %v831_v44, %v830_v43  ;;  %v739_v50 = vadd.f32 %v2845_v3, %v738_v46  ;;  %v836_v59 = vmax.f32 %v747_v52, %v2853_v10 }
 0x1d6   : > { %v2303_v48 = vpop.f32.mrf.mxu1 }
 0x1d7   : > { %v750_v51 = vadd.f32 %v2303_v48, %v2845_v3  ;;  %2344 = vmatprep.mubr.bf16.mxu0 %v858_v47  ;;  %v834_v57 = vmax.f32 %v739_v50, %v2853_v10 }
 0x1d8   : > { %v741_v53 = vpop.f32.mrf.mxu1  ;;  %2345 = vmatmul.mubr.bf16.gmra.mxu0 %v859_v49 }
 0x1d9   : > { %v742_v54 = vadd.f32 %v2845_v3, %v741_v53  ;;  %v837_v55 = vmax.f32 %v750_v51, %v2853_v10 }
 0x1da   : > { %v2306_v56 = vpop.f32.mrf.mxu1 }
 0x1db   : > { %v835_v58 = vmax.f32 %v742_v54, %v2853_v10  ;;  %v861_v61 = vpack.c.bf16 %v837_v55, %v836_v59  ;;  %v763_v0 = vadd.f32 %v2306_v56, %v2845_v3  ;;  %v2455_v55 = vld [vmem:[%s3315_s4] sm:$0xff]  }
 0x1dc   : > { %v754_v9 = vpop.f32.mrf.mxu1  ;;  %2382 = vmatprep.subr.bf16.mxu1 %v2455_v55 }
 0x1dd   : > { %v860_v60 = vpack.c.bf16 %v835_v58, %v834_v57  ;;  %v755_v62 = vadd.f32 %v2845_v3, %v754_v9  ;;  %v840_v8 = vmax.f32 %v763_v0, %v2853_v10  ;;  %2383 = vmatpush3.bf16.msra.mxu1 %v2455_v55  ;;  %v2922_v57 = vld [vmem:[%s3316_s5 + $0x4] ss:$0 sm:$0xff] }
 0x1de   : > { %v2307_v15 = vpop.f32.mrf.mxu1 }
 0x1df   : > { %v766_v63 = vadd.f32 %v2307_v15, %v2845_v3  ;;  %2348 = vmatprep.mubr.bf16.mxu0 %v860_v60  ;;  %v838_v6 = vmax.f32 %v755_v62, %v2853_v10  ;;  %v2930_v15 = vld [vmem:[%s3316_s5 + $0x5] ss:$0 sm:$0xff] }
 0x1e0   : > { %v757_v1 = vpop.f32.mrf.mxu1  ;;  %2349 = vmatmul.mubr.bf16.gmra.mxu0 %v861_v61 }
 0x1e1   : > { %v758_v2 = vadd.f32 %v2845_v3, %v757_v1  ;;  %v841_v4 = vmax.f32 %v766_v63, %v2853_v10 }
 0x1e2   : > { %v2310_v5 = vpop.f32.mrf.mxu1 }
 0x1e3   : > { %v839_v7 = vmax.f32 %v758_v2, %v2853_v10  ;;  %v863_v14 = vpack.c.bf16 %v841_v4, %v840_v8  ;;  %v779_v18 = vadd.f32 %v2310_v5, %v2845_v3 }
 0x1e4   : > { %v770_v11 = vpop.f32.mrf.mxu1 }
 0x1e5   : > { %v862_v12 = vpack.c.bf16 %v839_v7, %v838_v6  ;;  %v771_v16 = vadd.f32 %v2845_v3, %v770_v11  ;;  %v844_v25 = vmax.f32 %v779_v18, %v2853_v10 }
 0x1e6   : > { %v2311_v13 = vpop.f32.mrf.mxu1 }
 0x1e7   : > { %v782_v17 = vadd.f32 %v2311_v13, %v2845_v3  ;;  %2352 = vmatprep.mubr.bf16.mxu0 %v862_v12  ;;  %v842_v23 = vmax.f32 %v771_v16, %v2853_v10 }
 0x1e8   : > { %v773_v19 = vpop.f32.mrf.mxu1  ;;  %2353 = vmatmul.mubr.bf16.gmra.mxu0 %v863_v14 }
 0x1e9   : > { %v774_v20 = vadd.f32 %v2845_v3, %v773_v19  ;;  %v845_v21 = vmax.f32 %v782_v17, %v2853_v10 }
 0x1ea   : > { %v2314_v22 = vpop.f32.mrf.mxu1 }
 0x1eb   : > { %v843_v24 = vmax.f32 %v774_v20, %v2853_v10  ;;  %v865_v29 = vpack.c.bf16 %v845_v21, %v844_v25  ;;  %v795_v32 = vadd.f32 %v2314_v22, %v2845_v3 }
 0x1ec   : > { %v786_v26 = vpop.f32.mrf.mxu1 }
 0x1ed   : > { %v864_v27 = vpack.c.bf16 %v843_v24, %v842_v23  ;;  %v787_v30 = vadd.f32 %v2845_v3, %v786_v26  ;;  %v848_v39 = vmax.f32 %v795_v32, %v2853_v10 }
 0x1ee   : > { %v2315_v28 = vpop.f32.mrf.mxu1 }
 0x1ef   : > { %v798_v31 = vadd.f32 %v2315_v28, %v2845_v3  ;;  %2356 = vmatprep.mubr.bf16.mxu0 %v864_v27  ;;  %v846_v37 = vmax.f32 %v787_v30, %v2853_v10 }
 0x1f0   : > { %v789_v33 = vpop.f32.mrf.mxu1  ;;  %2357 = vmatmul.mubr.bf16.gmra.mxu0 %v865_v29 }
 0x1f1   : > { %v790_v34 = vadd.f32 %v2845_v3, %v789_v33  ;;  %v849_v35 = vmax.f32 %v798_v31, %v2853_v10 }
 0x1f2   : > { %v2318_v36 = vpop.f32.mrf.mxu1 }
 0x1f3   : > { %v847_v38 = vmax.f32 %v790_v34, %v2853_v10  ;;  %v867_v43 = vpack.c.bf16 %v849_v35, %v848_v39  ;;  %v811_v46 = vadd.f32 %v2318_v36, %v2845_v3 }
 0x1f4   : > { %v802_v40 = vpop.f32.mrf.mxu1 }
 0x1f5   : > { %v866_v41 = vpack.c.bf16 %v847_v38, %v846_v37  ;;  %v803_v44 = vadd.f32 %v2845_v3, %v802_v40  ;;  %v852_v52 = vmax.f32 %v811_v46, %v2853_v10 }
 0x1f6   : > { %v2319_v42 = vpop.f32.mrf.mxu1 }
 0x1f7   : > { %v814_v45 = vadd.f32 %v2319_v42, %v2845_v3  ;;  %2360 = vmatprep.mubr.bf16.mxu0 %v866_v41  ;;  %v850_v50 = vmax.f32 %v803_v44, %v2853_v10 }
 0x1f8   : > { %v805_v47 = vpop.f32.mrf.mxu1  ;;  %2361 = vmatmul.mubr.bf16.gmra.mxu0 %v867_v43 }
 0x1f9   : > { %v806_v48 = vadd.f32 %v2845_v3, %v805_v47  ;;  %v853_v49 = vmax.f32 %v814_v45, %v2853_v10 }
 0x1fb   : > { %v851_v51 = vmax.f32 %v806_v48, %v2853_v10  ;;  %v869_v54 = vpack.c.bf16 %v853_v49, %v852_v52 }
 0x1fd   : > { %v868_v53 = vpack.c.bf16 %v851_v51, %v850_v50 }
 0x1ff   : > { %2364 = vmatprep.mubr.bf16.mxu0 %v868_v53 }
 0x200   : > { %2365 = vmatmul.mubr.bf16.gmra.mxu0 %v869_v54 }
 0x288   : > { %v2338_v56 = vpop.f32.mrf.mxu0 }
 0x289   : > { %v982_v9 = vadd.f32 %v2338_v56, %v2922_v57 }
 0x28a   : > { %v973_v3 = vpop.f32.mrf.mxu0 }
 0x28b   : > { %v974_v10 = vadd.f32 %v2922_v57, %v973_v3  ;;  %v1107_v2 = vmax.f32 %v982_v9, %v2930_v15 }
 0x28c   : > { %v2339_v58 = vpop.f32.mrf.mxu0 }
 0x28d   : > { %v985_v59 = vadd.f32 %v2339_v58, %v2922_v57  ;;  %v1105_v0 = vmax.f32 %v974_v10, %v2930_v15 }
 0x28e   : > { %v976_v60 = vpop.f32.mrf.mxu0 }
 0x28f   : > { %v977_v61 = vadd.f32 %v2922_v57, %v976_v60  ;;  %v1108_v62 = vmax.f32 %v985_v59, %v2930_v15 }
 0x290   : > { %v2342_v63 = vpop.f32.mrf.mxu0 }
 0x291   : > { %v1106_v1 = vmax.f32 %v977_v61, %v2930_v15  ;;  %v1138_v6 = vpack.c.bf16 %v1108_v62, %v1107_v2  ;;  %v998_v12 = vadd.f32 %v2342_v63, %v2922_v57 }
 0x292   : > { %v989_v4 = vpop.f32.mrf.mxu0 }
 0x293   : > { %v1137_v5 = vpack.c.bf16 %v1106_v1, %v1105_v0  ;;  %v990_v8 = vadd.f32 %v2922_v57, %v989_v4  ;;  %v1111_v20 = vmax.f32 %v998_v12, %v2930_v15 }
 0x294   : > { %v2343_v7 = vpop.f32.mrf.mxu0 }
 0x295   : > { %v1001_v11 = vadd.f32 %v2343_v7, %v2922_v57  ;;  %2384 = vmatprep.mubr.bf16.mxu1 %v1137_v5  ;;  %v1109_v18 = vmax.f32 %v990_v8, %v2930_v15 }
 0x296   : > { %v992_v13 = vpop.f32.mrf.mxu0  ;;  %2385 = vmatmul.mubr.bf16.vlgmr.msra.gmra.mxu1 %v1138_v6 }
 0x297   : > { %v993_v14 = vadd.f32 %v2922_v57, %v992_v13  ;;  %v1112_v16 = vmax.f32 %v1001_v11, %v2930_v15 }
 0x298   : > { %v2346_v17 = vpop.f32.mrf.mxu0 }
 0x299   : > { %v1110_v19 = vmax.f32 %v993_v14, %v2930_v15  ;;  %v1140_v24 = vpack.c.bf16 %v1112_v16, %v1111_v20  ;;  %v1014_v27 = vadd.f32 %v2346_v17, %v2922_v57 }
 0x29a   : > { %v1005_v21 = vpop.f32.mrf.mxu0 }
 0x29b   : > { %v1139_v22 = vpack.c.bf16 %v1110_v19, %v1109_v18  ;;  %v1006_v25 = vadd.f32 %v2922_v57, %v1005_v21  ;;  %v1115_v34 = vmax.f32 %v1014_v27, %v2930_v15 }
 0x29c   : > { %v2347_v23 = vpop.f32.mrf.mxu0 }
 0x29d   : > { %v1017_v26 = vadd.f32 %v2347_v23, %v2922_v57  ;;  %2388 = vmatprep.mubr.bf16.mxu1 %v1139_v22  ;;  %v1113_v32 = vmax.f32 %v1006_v25, %v2930_v15 }
 0x29e   : > { %v1008_v28 = vpop.f32.mrf.mxu0  ;;  %2389 = vmatmul.mubr.bf16.gmra.mxu1 %v1140_v24 }
 0x29f   : > { %v1009_v29 = vadd.f32 %v2922_v57, %v1008_v28  ;;  %v1116_v30 = vmax.f32 %v1017_v26, %v2930_v15 }
 0x2a0   : > { %v2350_v31 = vpop.f32.mrf.mxu0 }
 0x2a1   : > { %v1114_v33 = vmax.f32 %v1009_v29, %v2930_v15  ;;  %v1142_v38 = vpack.c.bf16 %v1116_v30, %v1115_v34  ;;  %v1030_v41 = vadd.f32 %v2350_v31, %v2922_v57 }
 0x2a2   : > { %v1021_v35 = vpop.f32.mrf.mxu0 }
 0x2a3   : > { %v1141_v36 = vpack.c.bf16 %v1114_v33, %v1113_v32  ;;  %v1022_v39 = vadd.f32 %v2922_v57, %v1021_v35  ;;  %v1119_v48 = vmax.f32 %v1030_v41, %v2930_v15 }
 0x2a4   : > { %v2351_v37 = vpop.f32.mrf.mxu0 }
 0x2a5   : > { %v1033_v40 = vadd.f32 %v2351_v37, %v2922_v57  ;;  %2392 = vmatprep.mubr.bf16.mxu1 %v1141_v36  ;;  %v1117_v46 = vmax.f32 %v1022_v39, %v2930_v15 }
 0x2a6   : > { %v1024_v42 = vpop.f32.mrf.mxu0  ;;  %2393 = vmatmul.mubr.bf16.gmra.mxu1 %v1142_v38 }
 0x2a7   : > { %v1025_v43 = vadd.f32 %v2922_v57, %v1024_v42  ;;  %v1120_v44 = vmax.f32 %v1033_v40, %v2930_v15 }
 0x2a8   : > { %v2354_v45 = vpop.f32.mrf.mxu0 }
 0x2a9   : > { %v1118_v47 = vmax.f32 %v1025_v43, %v2930_v15  ;;  %v1144_v52 = vpack.c.bf16 %v1120_v44, %v1119_v48  ;;  %v1046_v55 = vadd.f32 %v2354_v45, %v2922_v57  ;;  %v2996_v44 = vld [vmem:[%s3316_s5 + $0x6] ss:$0 sm:$0xff] }
 0x2aa   : > { %v1037_v49 = vpop.f32.mrf.mxu0 }
 0x2ab   : > { %v1143_v50 = vpack.c.bf16 %v1118_v47, %v1117_v46  ;;  %v1038_v53 = vadd.f32 %v2922_v57, %v1037_v49  ;;  %v1123_v60 = vmax.f32 %v1046_v55, %v2930_v15 }
 0x2ac   : > { %v2355_v51 = vpop.f32.mrf.mxu0 }
 0x2ad   : > { %v1049_v54 = vadd.f32 %v2355_v51, %v2922_v57  ;;  %2396 = vmatprep.mubr.bf16.mxu1 %v1143_v50  ;;  %v1121_v59 = vmax.f32 %v1038_v53, %v2930_v15 }
 0x2ae   : > { %v1040_v56 = vpop.f32.mrf.mxu0  ;;  %2397 = vmatmul.mubr.bf16.gmra.mxu1 %v1144_v52 }
 0x2af   : > { %v1041_v3 = vadd.f32 %v2922_v57, %v1040_v56  ;;  %v1124_v58 = vmax.f32 %v1049_v54, %v2930_v15 }
 0x2b0   : > { %v2358_v10 = vpop.f32.mrf.mxu0 }
 0x2b1   : > { %v1122_v9 = vmax.f32 %v1041_v3, %v2930_v15  ;;  %v1146_v0 = vpack.c.bf16 %v1124_v58, %v1123_v60  ;;  %v1062_v4 = vadd.f32 %v2358_v10, %v2922_v57 }
 0x2b2   : > { %v1053_v61 = vpop.f32.mrf.mxu0 }
 0x2b3   : > { %v1145_v62 = vpack.c.bf16 %v1122_v9, %v1121_v59  ;;  %v1054_v1 = vadd.f32 %v2922_v57, %v1053_v61  ;;  %v1127_v13 = vmax.f32 %v1062_v4, %v2930_v15 }
 0x2b4   : > { %v2359_v63 = vpop.f32.mrf.mxu0 }
 0x2b5   : > { %v1065_v2 = vadd.f32 %v2359_v63, %v2922_v57  ;;  %2400 = vmatprep.mubr.bf16.mxu1 %v1145_v62  ;;  %v1125_v11 = vmax.f32 %v1054_v1, %v2930_v15 }
 0x2b6   : > { %v1056_v5 = vpop.f32.mrf.mxu0  ;;  %2401 = vmatmul.mubr.bf16.gmra.mxu1 %v1146_v0 }
 0x2b7   : > { %v1057_v6 = vadd.f32 %v2922_v57, %v1056_v5  ;;  %v1128_v7 = vmax.f32 %v1065_v2, %v2930_v15 }
 0x2b8   : > { %v2362_v8 = vpop.f32.mrf.mxu0 }
 0x2b9   : > { %v1126_v12 = vmax.f32 %v1057_v6, %v2930_v15  ;;  %v1148_v18 = vpack.c.bf16 %v1128_v7, %v1127_v13  ;;  %v1078_v21 = vadd.f32 %v2362_v8, %v2922_v57 }
 0x2ba   : > { %v1069_v14 = vpop.f32.mrf.mxu0 }
 0x2bb   : > { %v1147_v16 = vpack.c.bf16 %v1126_v12, %v1125_v11  ;;  %v1070_v19 = vadd.f32 %v2922_v57, %v1069_v14  ;;  %v1131_v28 = vmax.f32 %v1078_v21, %v2930_v15 }
 0x2bc   : > { %v2363_v17 = vpop.f32.mrf.mxu0 }
 0x2bd   : > { %v1081_v20 = vadd.f32 %v2363_v17, %v2922_v57  ;;  %2404 = vmatprep.mubr.bf16.mxu1 %v1147_v16  ;;  %v1129_v26 = vmax.f32 %v1070_v19, %v2930_v15 }
 0x2be   : > { %v1072_v22 = vpop.f32.mrf.mxu0  ;;  %2405 = vmatmul.mubr.bf16.gmra.mxu1 %v1148_v18 }
 0x2bf   : > { %v1073_v23 = vadd.f32 %v2922_v57, %v1072_v22  ;;  %v1132_v24 = vmax.f32 %v1081_v20, %v2930_v15 }
 0x2c0   : > { %v2366_v25 = vpop.f32.mrf.mxu0 }
 0x2c1   : > { %v1130_v27 = vmax.f32 %v1073_v23, %v2930_v15  ;;  %v1150_v32 = vpack.c.bf16 %v1132_v24, %v1131_v28  ;;  %v1094_v35 = vadd.f32 %v2366_v25, %v2922_v57 }
 0x2c2   : > { %v1085_v29 = vpop.f32.mrf.mxu0 }
 0x2c3   : > { %v1149_v30 = vpack.c.bf16 %v1130_v27, %v1129_v26  ;;  %v1086_v33 = vadd.f32 %v2922_v57, %v1085_v29  ;;  %v1135_v41 = vmax.f32 %v1094_v35, %v2930_v15 }
 0x2c4   : > { %v2367_v31 = vpop.f32.mrf.mxu0 }
 0x2c5   : > { %v1097_v34 = vadd.f32 %v2367_v31, %v2922_v57  ;;  %2408 = vmatprep.mubr.bf16.mxu1 %v1149_v30  ;;  %v1133_v39 = vmax.f32 %v1086_v33, %v2930_v15 }
 0x2c6   : > { %v1088_v36 = vpop.f32.mrf.mxu0  ;;  %2409 = vmatmul.mubr.bf16.gmra.mxu1 %v1150_v32 }
 0x2c7   : > { %v1089_v37 = vadd.f32 %v2922_v57, %v1088_v36  ;;  %v1136_v38 = vmax.f32 %v1097_v34, %v2930_v15 }
 0x2c9   : > { %v1134_v40 = vmax.f32 %v1089_v37, %v2930_v15  ;;  %v1152_v43 = vpack.c.bf16 %v1136_v38, %v1135_v41 }
 0x2cb   : > { %v1151_v42 = vpack.c.bf16 %v1134_v40, %v1133_v39 }
 0x2cd   : > { %2412 = vmatprep.mubr.bf16.mxu1 %v1151_v42 }
 0x2ce   : > { %2413 = vmatmul.mubr.bf16.gmra.mxu1 %v1152_v43 }
 0x356   : > { %v2386_v45 = vpop.f32.mrf.mxu1 }
 0x357   : > { %v2999_v57 = vadd.f32 %v2386_v45, %v2996_v44 }
 0x358   : > { %v1256_v46 = vpop.f32.mrf.mxu1 }
 0x359   : > { %v3002_v47 = vadd.f32 %v2996_v44, %v1256_v46  ;;  %1387 = vmax.xlane.f32.xlu1 %v2999_v57 }
 0x35a   : > { %v2387_v15 = vpop.f32.mrf.mxu1 }
 0x35b   : > { %v3006_v48 = vadd.f32 %v2387_v15, %v2996_v44  ;;  %1383 = vmax.xlane.f32.xlu0 %v3002_v47 }
 0x35c   : > { %v1259_v49 = vpop.f32.mrf.mxu1 }
 0x35d   : > { %v3010_v50 = vadd.f32 %v2996_v44, %v1259_v49  ;;  %1389 = vmax.xlane.f32.xlu1 %v3006_v48 }
 0x35e   : > { %v2390_v51 = vpop.f32.mrf.mxu1 }
 0x35f   : > { %1385 = vmax.xlane.f32.xlu0 %v3010_v50  ;;  %v3015_v53 = vadd.f32 %v2390_v51, %v2996_v44 }
 0x360   : > { %v1272_v52 = vpop.f32.mrf.mxu1 }
 0x361   : > { %v3022_v3 = vadd.f32 %v2996_v44, %v1272_v52 }
 0x362   : > { %v2391_v54 = vpop.f32.mrf.mxu1 }
 0x363   : > { %v3018_v55 = vadd.f32 %v2391_v54, %v2996_v44  ;;  %1395 = vmax.xlane.f32.xlu0 %v3015_v53 }
 0x364   : > { %v1275_v56 = vpop.f32.mrf.mxu1 }
 0x365   : > { %1397 = vmax.xlane.f32.xlu1 %v3018_v55  ;;  %v3026_v10 = vadd.f32 %v2996_v44, %v1275_v56 }
 0x366   : > { %v2394_v58 = vpop.f32.mrf.mxu1 }
 0x367   : > { %1391 = vmax.xlane.f32.xlu0 %v3022_v3  ;;  %v3030_v9 = vadd.f32 %v2394_v58, %v2996_v44 }
 0x368   : > { %v1288_v59 = vpop.f32.mrf.mxu1 }
 0x369   : > { %1393 = vmax.xlane.f32.xlu1 %v3026_v10  ;;  %v3038_v63 = vadd.f32 %v2996_v44, %v1288_v59 }
 0x36a   : > { %v2395_v60 = vpop.f32.mrf.mxu1 }
 0x36b   : > { %v3034_v61 = vadd.f32 %v2395_v60, %v2996_v44  ;;  %1403 = vmax.xlane.f32.xlu0 %v3030_v9 }
 0x36c   : > { %v1291_v62 = vpop.f32.mrf.mxu1 }
 0x36d   : > { %1405 = vmax.xlane.f32.xlu1 %v3034_v61  ;;  %v3042_v1 = vadd.f32 %v2996_v44, %v1291_v62 }
 0x36e   : > { %v2398_v0 = vpop.f32.mrf.mxu1 }
 0x36f   : > { %1399 = vmax.xlane.f32.xlu0 %v3038_v63  ;;  %v3046_v4 = vadd.f32 %v2398_v0, %v2996_v44 }
 0x370   : > { %v1304_v2 = vpop.f32.mrf.mxu1 }
 0x371   : > { %1401 = vmax.xlane.f32.xlu1 %v3042_v1  ;;  %v3054_v8 = vadd.f32 %v2996_v44, %v1304_v2 }
 0x372   : > { %v2399_v5 = vpop.f32.mrf.mxu1 }
 0x373   : > { %v3050_v6 = vadd.f32 %v2399_v5, %v2996_v44  ;;  %1411 = vmax.xlane.f32.xlu0 %v3046_v4 }
 0x374   : > { %v1307_v7 = vpop.f32.mrf.mxu1 }
 0x375   : > { %1413 = vmax.xlane.f32.xlu1 %v3050_v6  ;;  %v3058_v12 = vadd.f32 %v2996_v44, %v1307_v7 }
 0x376   : > { %v2402_v11 = vpop.f32.mrf.mxu1 }
 0x377   : > { %1407 = vmax.xlane.f32.xlu0 %v3054_v8  ;;  %v3062_v14 = vadd.f32 %v2402_v11, %v2996_v44 }
 0x378   : > { %v1320_v13 = vpop.f32.mrf.mxu1 }
 0x379   : > { %1409 = vmax.xlane.f32.xlu1 %v3058_v12  ;;  %v3070_v19 = vadd.f32 %v2996_v44, %v1320_v13 }
 0x37a   : > { %v2403_v16 = vpop.f32.mrf.mxu1 }
 0x37b   : > { %v3066_v17 = vadd.f32 %v2403_v16, %v2996_v44  ;;  %1419 = vmax.xlane.f32.xlu0 %v3062_v14 }
 0x37c   : > { %v1323_v18 = vpop.f32.mrf.mxu1 }
 0x37d   : > { %1421 = vmax.xlane.f32.xlu1 %v3066_v17  ;;  %v3074_v21 = vadd.f32 %v2996_v44, %v1323_v18 }
 0x37e   : > { %v2406_v20 = vpop.f32.mrf.mxu1 }
 0x37f   : > { %1415 = vmax.xlane.f32.xlu0 %v3070_v19  ;;  %v3078_v23 = vadd.f32 %v2406_v20, %v2996_v44 }
 0x380   : > { %v1336_v22 = vpop.f32.mrf.mxu1 }
 0x381   : > { %1417 = vmax.xlane.f32.xlu1 %v3074_v21  ;;  %v3086_v27 = vadd.f32 %v2996_v44, %v1336_v22 }
 0x382   : > { %v2407_v24 = vpop.f32.mrf.mxu1 }
 0x383   : > { %v3082_v25 = vadd.f32 %v2407_v24, %v2996_v44  ;;  %1427 = vmax.xlane.f32.xlu0 %v3078_v23 }
 0x384   : > { %v1339_v26 = vpop.f32.mrf.mxu1 }
 0x385   : > { %1429 = vmax.xlane.f32.xlu1 %v3082_v25  ;;  %v3090_v29 = vadd.f32 %v2996_v44, %v1339_v26 }
 0x386   : > { %v2410_v28 = vpop.f32.mrf.mxu1 }
 0x387   : > { %1423 = vmax.xlane.f32.xlu0 %v3086_v27  ;;  %v3094_v31 = vadd.f32 %v2410_v28, %v2996_v44 }
 0x388   : > { %v1352_v30 = vpop.f32.mrf.mxu1 }
 0x389   : > { %1425 = vmax.xlane.f32.xlu1 %v3090_v29  ;;  %v3102_v35 = vadd.f32 %v2996_v44, %v1352_v30 }
 0x38a   : > { %v2411_v32 = vpop.f32.mrf.mxu1 }
 0x38b   : > { %v3098_v33 = vadd.f32 %v2411_v32, %v2996_v44  ;;  %1435 = vmax.xlane.f32.xlu0 %v3094_v31 }
 0x38c   : > { %v1355_v34 = vpop.f32.mrf.mxu1 }
 0x38d   : > { %1437 = vmax.xlane.f32.xlu1 %v3098_v33  ;;  %v3106_v37 = vadd.f32 %v2996_v44, %v1355_v34 }
 0x38e   : > { %v2414_v36 = vpop.f32.mrf.mxu1 }
 0x38f   : > { %1431 = vmax.xlane.f32.xlu0 %v3102_v35  ;;  %v3115_v42 = vadd.f32 %v2414_v36, %v2996_v44 }
 0x390   : > { %v1368_v38 = vpop.f32.mrf.mxu1 }
 0x391   : > { %v3110_v39 = vadd.f32 %v2996_v44, %v1368_v38  ;;  %1433 = vmax.xlane.f32.xlu1 %v3106_v37 }
 0x392   : > { %v2415_v40 = vpop.f32.mrf.mxu1 }
 0x393   : > { %1439 = vmax.xlane.f32.xlu0 %v3110_v39  ;;  %v3123_v45 = vadd.f32 %v2415_v40, %v2996_v44 }
 0x394   : > { %v1371_v41 = vpop.f32.mrf.mxu1 }
 0x395   : > { %v3118_v43 = vadd.f32 %v2996_v44, %v1371_v41 }
 0x397   : > { %1441 = vmax.xlane.f32.xlu1 %v3118_v43  ;;  %1443 = vmax.xlane.f32.xlu0 %v3115_v42 }
 0x39b   : > { %1445 = vmax.xlane.f32.xlu1 %v3123_v45 }
 0x3e2   : > { %v1388_v46 = vpop.xlane.xlu1 %1387 }
 0x3e3   : > { %v3127_v15 = vsub.f32 %v2999_v57, %v1388_v46 }
 0x3e4   : > { %v1384_v49 = vpop.xlane.xlu0 %1383 }
 0x3e5   : > { %v1483_v51 = vmul.f32 1.442695, %v3127_v15  ;;  %v3131_v52 = vsub.f32 %v3002_v47, %v1384_v49 }
 0x3e6   : > { %v1390_v54 = vpop.xlane.xlu1 %1389 }
 0x3e7   : > { %2456 = vpow2.f32 %v1483_v51  ;;  %v1479_v56 = vmul.f32 1.442695, %v3131_v52  ;;  %v3135_v58 = vsub.f32 %v3006_v48, %v1390_v54 }
 0x3e8   : > { %v1386_v44 = vpop.xlane.xlu0 %1385 }
 0x3e9   : > { %v1485_v59 = vmul.f32 1.442695, %v3135_v58  ;;  %v3139_v60 = vsub.f32 %v3010_v50, %v1386_v44  ;;  %2458 = vpow2.f32 %v1479_v56 }
 0x3eb   : > { %2460 = vpow2.f32 %v1485_v59  ;;  %v1481_v57 = vmul.f32 1.442695, %v3139_v60 }
 0x3ec   : > { %v1396_v62 = vpop.xlane.xlu0 %1395 }
 0x3ed   : > { %v3143_v47 = vsub.f32 %v3015_v53, %v1396_v62  ;;  %2462 = vpow2.f32 %v1481_v57 }
 0x3ee   : > { %v1398_v0 = vpop.xlane.xlu1 %1397 }
 0x3ef   : > { %v1491_v2 = vmul.f32 1.442695, %v3143_v47  ;;  %v3147_v48 = vsub.f32 %v3018_v55, %v1398_v0 }
 0x3f0   : > { %v1392_v5 = vpop.xlane.xlu0 %1391 }
 0x3f1   : > { %2464 = vpow2.f32 %v1491_v2  ;;  %v1493_v50 = vmul.f32 1.442695, %v3147_v48  ;;  %v3151_v7 = vsub.f32 %v3022_v3, %v1392_v5 }
 0x3f2   : > { %v1394_v11 = vpop.xlane.xlu1 %1393 }
 0x3f3   : > { %2466 = vpow2.f32 %v1493_v50  ;;  %v1487_v13 = vmul.f32 1.442695, %v3151_v7  ;;  %v3155_v53 = vsub.f32 %v3026_v10, %v1394_v11 }
 0x3f4   : > { %v2457_v16 = vpop.eup %2456  ;;  %v1404_v18 = vpop.xlane.xlu0 %1403 }
 0x3f5   : > { %2468 = vpow2.f32 %v1487_v13  ;;  %v1489_v55 = vmul.f32 1.442695, %v3155_v53  ;;  %v3159_v20 = vsub.f32 %v3030_v9, %v1404_v18  ;;  %1547 = vadd.xlane.f32.xlu0 %v2457_v16 }
 0x3f6   : > { %v1406_v22 = vpop.xlane.xlu1 %1405  ;;  %v2459_v24 = vpop.eup %2458 }
 0x3f7   : > { %2470 = vpow2.f32 %v1489_v55  ;;  %v1499_v3 = vmul.f32 1.442695, %v3159_v20  ;;  %v3163_v26 = vsub.f32 %v3034_v61, %v1406_v22 }
 0x3f8   : > { %v2461_v28 = vpop.eup %2460  ;;  %v1400_v10 = vpop.xlane.xlu0 %1399 }
 0x3f9   : > { %2472 = vpow2.f32 %v1499_v3  ;;  %v1501_v30 = vmul.f32 1.442695, %v3163_v26  ;;  %v3167_v32 = vsub.f32 %v3038_v63, %v1400_v10  ;;  %1549 = vadd.xlane.f32.xlu1 %v2461_v28  ;;  %1543 = vadd.xlane.f32.xlu0 %v2459_v24 }
 0x3fa   : > { %v1402_v9 = vpop.xlane.xlu1 %1401  ;;  %v2463_v38 = vpop.eup %2462 }
 0x3fb   : > { %2474 = vpow2.f32 %v1501_v30  ;;  %v1495_v34 = vmul.f32 1.442695, %v3167_v32  ;;  %v3171_v36 = vsub.f32 %v3042_v1, %v1402_v9 }
 0x3fc   : > { %v1412_v61 = vpop.xlane.xlu0 %1411 }
 0x3fd   : > { %2476 = vpow2.f32 %v1495_v34  ;;  %v1497_v40 = vmul.f32 1.442695, %v3171_v36  ;;  %v3175_v41 = vsub.f32 %v3046_v4, %v1412_v61  ;;  %1545 = vadd.xlane.f32.xlu1 %v2463_v38 }
 0x3fe   : > { %v2465_v63 = vpop.eup %2464  ;;  %v1414_v46 = vpop.xlane.xlu1 %1413 }
 0x3ff   : > { %2478 = vpow2.f32 %v1497_v40  ;;  %v1507_v49 = vmul.f32 1.442695, %v3175_v41  ;;  %v3179_v51 = vsub.f32 %v3050_v6, %v1414_v46  ;;  %1555 = vadd.xlane.f32.xlu0 %v2465_v63 }
 0x400   : > { %v2467_v1 = vpop.eup %2466  ;;  %v1408_v54 = vpop.xlane.xlu0 %1407 }
 0x401   : > { %2480 = vpow2.f32 %v1507_v49  ;;  %v1509_v56 = vmul.f32 1.442695, %v3179_v51  ;;  %v3183_v44 = vsub.f32 %v3054_v8, %v1408_v54  ;;  %1557 = vadd.xlane.f32.xlu1 %v2467_v1 }
 0x402   : > { %v2469_v4 = vpop.eup %2468  ;;  %v1410_v59 = vpop.xlane.xlu1 %1409 }
 0x403   : > { %2482 = vpow2.f32 %v1509_v56  ;;  %v1503_v57 = vmul.f32 1.442695, %v3183_v44  ;;  %v3187_v62 = vsub.f32 %v3058_v12, %v1410_v59  ;;  %1551 = vadd.xlane.f32.xlu0 %v2469_v4 }
 0x404   : > { %v2471_v6 = vpop.eup %2470  ;;  %v1420_v0 = vpop.xlane.xlu0 %1419 }
 0x405   : > { %2484 = vpow2.f32 %v1503_v57  ;;  %v1505_v2 = vmul.f32 1.442695, %v3187_v62  ;;  %v3191_v5 = vsub.f32 %v3062_v14, %v1420_v0  ;;  %1553 = vadd.xlane.f32.xlu1 %v2471_v6 }
 0x406   : > { %v2473_v8 = vpop.eup %2472  ;;  %v1422_v50 = vpop.xlane.xlu1 %1421 }
 0x407   : > { %2486 = vpow2.f32 %v1505_v2  ;;  %v1515_v11 = vmul.f32 1.442695, %v3191_v5  ;;  %v3195_v13 = vsub.f32 %v3066_v17, %v1422_v50  ;;  %1563 = vadd.xlane.f32.xlu0 %v2473_v8 }
 0x408   : > { %v2475_v12 = vpop.eup %2474  ;;  %v1416_v16 = vpop.xlane.xlu0 %1415 }
 0x409   : > { %2488 = vpow2.f32 %v1515_v11  ;;  %v1517_v18 = vmul.f32 1.442695, %v3195_v13  ;;  %v3199_v55 = vsub.f32 %v3070_v19, %v1416_v16  ;;  %1565 = vadd.xlane.f32.xlu1 %v2475_v12 }
 0x40a   : > { %v2477_v14 = vpop.eup %2476  ;;  %v1418_v22 = vpop.xlane.xlu1 %1417 }
 0x40b   : > { %2490 = vpow2.f32 %v1517_v18  ;;  %v1511_v24 = vmul.f32 1.442695, %v3199_v55  ;;  %v3203_v3 = vsub.f32 %v3074_v21, %v1418_v22  ;;  %1559 = vadd.xlane.f32.xlu0 %v2477_v14 }
 0x40c   : > { %v2479_v17 = vpop.eup %2478  ;;  %v1428_v28 = vpop.xlane.xlu0 %1427 }
 0x40d   : > { %2492 = vpow2.f32 %v1511_v24  ;;  %v1513_v10 = vmul.f32 1.442695, %v3203_v3  ;;  %v3207_v30 = vsub.f32 %v3078_v23, %v1428_v28  ;;  %1561 = vadd.xlane.f32.xlu1 %v2479_v17 }
 0x40e   : > { %v2481_v19 = vpop.eup %2480  ;;  %v1430_v9 = vpop.xlane.xlu1 %1429 }
 0x40f   : > { %2494 = vpow2.f32 %v1513_v10  ;;  %v1523_v34 = vmul.f32 1.442695, %v3207_v30  ;;  %v3211_v38 = vsub.f32 %v3082_v25, %v1430_v9  ;;  %1571 = vadd.xlane.f32.xlu0 %v2481_v19 }
 0x410   : > { %v2483_v21 = vpop.eup %2482  ;;  %v1424_v61 = vpop.xlane.xlu0 %1423 }
 0x411   : > { %2496 = vpow2.f32 %v1523_v34  ;;  %v1525_v40 = vmul.f32 1.442695, %v3211_v38  ;;  %v3215_v63 = vsub.f32 %v3086_v27, %v1424_v61  ;;  %1573 = vadd.xlane.f32.xlu1 %v2483_v21 }
 0x412   : > { %v2485_v23 = vpop.eup %2484  ;;  %v1426_v46 = vpop.xlane.xlu1 %1425 }
 0x413   : > { %2498 = vpow2.f32 %v1525_v40  ;;  %v1519_v49 = vmul.f32 1.442695, %v3215_v63  ;;  %v3219_v1 = vsub.f32 %v3090_v29, %v1426_v46  ;;  %1567 = vadd.xlane.f32.xlu0 %v2485_v23 }
 0x414   : > { %v2487_v25 = vpop.eup %2486  ;;  %v1436_v54 = vpop.xlane.xlu0 %1435 }
 0x415   : > { %2500 = vpow2.f32 %v1519_v49  ;;  %v1521_v56 = vmul.f32 1.442695, %v3219_v1  ;;  %v3223_v4 = vsub.f32 %v3094_v31, %v1436_v54  ;;  %1569 = vadd.xlane.f32.xlu1 %v2487_v25 }
 0x416   : > { %v2489_v27 = vpop.eup %2488  ;;  %v1438_v59 = vpop.xlane.xlu1 %1437 }
 0x417   : > { %2502 = vpow2.f32 %v1521_v56  ;;  %v1531_v57 = vmul.f32 1.442695, %v3223_v4  ;;  %v3227_v6 = vsub.f32 %v3098_v33, %v1438_v59  ;;  %1579 = vadd.xlane.f32.xlu0 %v2489_v27 }
 0x418   : > { %v2491_v29 = vpop.eup %2490  ;;  %v1432_v0 = vpop.xlane.xlu0 %1431 }
 0x419   : > { %2504 = vpow2.f32 %v1531_v57  ;;  %v1533_v2 = vmul.f32 1.442695, %v3227_v6  ;;  %v3231_v8 = vsub.f32 %v3102_v35, %v1432_v0  ;;  %1581 = vadd.xlane.f32.xlu1 %v2491_v29 }
 0x41a   : > { %v2493_v31 = vpop.eup %2492  ;;  %v1434_v50 = vpop.xlane.xlu1 %1433 }
 0x41b   : > { %2506 = vpow2.f32 %v1533_v2  ;;  %v1527_v11 = vmul.f32 1.442695, %v3231_v8  ;;  %v3235_v12 = vsub.f32 %v3106_v37, %v1434_v50  ;;  %1575 = vadd.xlane.f32.xlu0 %v2493_v31 }
 0x41c   : > { %v2495_v33 = vpop.eup %2494  ;;  %v1440_v16 = vpop.xlane.xlu0 %1439 }
 0x41d   : > { %2508 = vpow2.f32 %v1527_v11  ;;  %v1529_v18 = vmul.f32 1.442695, %v3235_v12  ;;  %v3239_v14 = vsub.f32 %v3110_v39, %v1440_v16  ;;  %1577 = vadd.xlane.f32.xlu1 %v2495_v33 }
 0x41e   : > { %v2497_v35 = vpop.eup %2496 }
 0x41f   : > { %2510 = vpow2.f32 %v1529_v18  ;;  %v1535_v22 = vmul.f32 1.442695, %v3239_v14  ;;  %1587 = vadd.xlane.f32.xlu0 %v2497_v35 }
 0x420   : > { %v2499_v24 = vpop.eup %2498  ;;  %v1442_v17 = vpop.xlane.xlu1 %1441 }
 0x421   : > { %v1444_v28 = vpop.xlane.xlu0 %1443  ;;  %2512 = vpow2.f32 %v1535_v22  ;;  %v3243_v37 = vsub.f32 %v3118_v43, %v1442_v17  ;;  %1589 = vadd.xlane.f32.xlu1 %v2499_v24 }
 0x422   : > { %v3246_v10 = vsub.f32 %v3115_v42, %v1444_v28  ;;  %v2501_v19 = vpop.eup %2500 }
 0x423   : > { %v1537_v39 = vmul.f32 1.442695, %v3243_v37  ;;  %1583 = vadd.xlane.f32.xlu0 %v2501_v19 }
 0x424   : > { %v1539_v9 = vmul.f32 1.442695, %v3246_v10  ;;  %v2503_v34 = vpop.eup %2502  ;;  %v1446_v21 = vpop.xlane.xlu1 %1445 }
 0x425   : > { %2514 = vpow2.f32 %v1537_v39  ;;  %v3251_v61 = vsub.f32 %v3123_v45, %v1446_v21  ;;  %1585 = vadd.xlane.f32.xlu1 %v2503_v34 }
 0x426   : > { %v2505_v40 = vpop.eup %2504  ;;  %2516 = vpow2.f32 %v1539_v9 }
 0x427   : > { %v1541_v43 = vmul.f32 1.442695, %v3251_v61  ;;  %1595 = vadd.xlane.f32.xlu0 %v2505_v40 }
 0x428   : > { %v2507_v42 = vpop.eup %2506 }
 0x429   : > { %2518 = vpow2.f32 %v1541_v43  ;;  %1597 = vadd.xlane.f32.xlu1 %v2507_v42 }
 0x42a   : > { %v2509_v23 = vpop.eup %2508 }
 0x42b   : > { %1591 = vadd.xlane.f32.xlu0 %v2509_v23 }
 0x42c   : > { %v2511_v46 = vpop.eup %2510 }
 0x42d   : > { %1593 = vadd.xlane.f32.xlu1 %v2511_v46 }
 0x42e   : > { %v2513_v49 = vpop.eup %2512 }
 0x42f   : > { %1599 = vadd.xlane.f32.xlu0 %v2513_v49 }
 0x432   : > { %v2515_v25 = vpop.eup %2514 }
 0x433   : > { %v2517_v54 = vpop.eup %2516  ;;  %1601 = vadd.xlane.f32.xlu1 %v2515_v25 }
 0x434   : > { %1603 = vadd.xlane.f32.xlu0 %v2517_v54 }
 0x436   : > { %v2519_v45 = vpop.eup %2518 }
 0x437   : > { %1605 = vadd.xlane.f32.xlu1 %v2519_v45 }
 0x47e   : > { %v1548_v56 = vpop.xlane.xlu0 %1547 }
 0x47f   : > { %2520 = vlog2.f32 %v1548_v56 }
 0x482   : > { %v1550_v27 = vpop.xlane.xlu1 %1549  ;;  %v1544_v59 = vpop.xlane.xlu0 %1543 }
 0x483   : > { %2522 = vlog2.f32 %v1550_v27 }
 0x484   : > { %2524 = vlog2.f32 %v1544_v59 }
 0x486   : > { %v1546_v57 = vpop.xlane.xlu1 %1545 }
 0x487   : > { %2526 = vlog2.f32 %v1546_v57 }
 0x488   : > { %v1556_v29 = vpop.xlane.xlu0 %1555 }
 0x489   : > { %2528 = vlog2.f32 %v1556_v29 }
 0x48a   : > { %v1558_v0 = vpop.xlane.xlu1 %1557 }
 0x48b   : > { %2530 = vlog2.f32 %v1558_v0 }
 0x48c   : > { %v2521_v2 = vpop.eup %2520  ;;  %v1552_v31 = vpop.xlane.xlu0 %1551 }
 0x48d   : > { %2532 = vlog2.f32 %v1552_v31  ;;  %v1612_v11 = vmul.f32 0.6931472, %v2521_v2 }
 0x48e   : > { %v1554_v50 = vpop.xlane.xlu1 %1553 }
 0x48f   : > { %2534 = vlog2.f32 %v1554_v50  ;;  %v1673_v24 = vsub.f32 %v3127_v15, %v1612_v11 }
 0x490   : > { %v2523_v33 = vpop.eup %2522  ;;  %v1564_v16 = vpop.xlane.xlu0 %1563 }
 0x491   : > { %v2525_v18 = vpop.eup %2524  ;;  %v1614_v35 = vmul.f32 0.6931472, %v2523_v33  ;;  %2536 = vlog2.f32 %v1564_v16 }
 0x492   : > { %v1566_v22 = vpop.xlane.xlu1 %1565  ;;  %v1608_v28 = vmul.f32 0.6931472, %v2525_v18 }
 0x493   : > { %v1674_v17 = vsub.f32 %v3135_v58, %v1614_v35  ;;  %2538 = vlog2.f32 %v1566_v22 }
 0x494   : > { %v2527_v19 = vpop.eup %2526  ;;  %v1560_v39 = vpop.xlane.xlu0 %1559  ;;  %v1671_v15 = vsub.f32 %v3131_v52, %v1608_v28 }
 0x495   : > { %v2041_v9 = vpack.c.bf16 %v1674_v17, %v1673_v24  ;;  %v1610_v34 = vmul.f32 0.6931472, %v2527_v19  ;;  %2540 = vlog2.f32 %v1560_v39 }
 0x496   : > { %v2529_v21 = vpop.eup %2528  ;;  %v1562_v40 = vpop.xlane.xlu1 %1561 }
 0x497   : > { %2113 = vst [vmem:[%s3260_s19 + $0x8] sm:$0xff] %v2041_v9   ;;  %v1672_v58 = vsub.f32 %v3139_v60, %v1610_v34  ;;  %v1620_v43 = vmul.f32 0.6931472, %v2529_v21  ;;  %2542 = vlog2.f32 %v1562_v40 }
 0x498   : > { %v2531_v42 = vpop.eup %2530  ;;  %v1572_v23 = vpop.xlane.xlu0 %1571 }
 0x499   : > { %v2036_v46 = vpack.c.bf16 %v1672_v58, %v1671_v15  ;;  %v1622_v49 = vmul.f32 0.6931472, %v2531_v42  ;;  %2544 = vlog2.f32 %v1572_v23  ;;  %v1677_v45 = vsub.f32 %v3143_v47, %v1620_v43 }
 0x49a   : > { %v2533_v25 = vpop.eup %2532  ;;  %v1574_v54 = vpop.xlane.xlu1 %1573 }
 0x49b   : > { %2037 = vst [vmem:[%s3260_s19] sm:$0xff] %v2036_v46   ;;  %v1678_v56 = vsub.f32 %v3147_v48, %v1622_v49  ;;  %v1616_v27 = vmul.f32 0.6931472, %v2533_v25  ;;  %2546 = vlog2.f32 %v1574_v54 }
 0x49c   : > { %v2535_v52 = vpop.eup %2534  ;;  %v1568_v59 = vpop.xlane.xlu0 %1567 }
 0x49d   : > { %v2051_v60 = vpack.c.bf16 %v1678_v56, %v1677_v45  ;;  %v1618_v57 = vmul.f32 0.6931472, %v2535_v52  ;;  %2548 = vlog2.f32 %v1568_v59  ;;  %v1675_v2 = vsub.f32 %v3151_v7, %v1616_v27 }
 0x49e   : > { %v2537_v29 = vpop.eup %2536  ;;  %v1570_v0 = vpop.xlane.xlu1 %1569 }
 0x49f   : > { %2115 = vst [vmem:[%s3260_s19 + $0x18] sm:$0xff] %v2051_v60   ;;  %v1676_v31 = vsub.f32 %v3155_v53, %v1618_v57  ;;  %v1628_v50 = vmul.f32 0.6931472, %v2537_v29  ;;  %2550 = vlog2.f32 %v1570_v0 }
 0x4a0   : > { %v2539_v47 = vpop.eup %2538  ;;  %v1580_v11 = vpop.xlane.xlu0 %1579 }
 0x4a1   : > { %v2046_v48 = vpack.c.bf16 %v1676_v31, %v1675_v2  ;;  %v1630_v33 = vmul.f32 0.6931472, %v2539_v47  ;;  %2552 = vlog2.f32 %v1580_v11  ;;  %v1681_v35 = vsub.f32 %v3159_v20, %v1628_v50 }
 0x4a2   : > { %v2541_v16 = vpop.eup %2540  ;;  %v1582_v18 = vpop.xlane.xlu1 %1581 }
 0x4a3   : > { %2114 = vst [vmem:[%s3260_s19 + $0x10] sm:$0xff] %v2046_v48   ;;  %v1682_v22 = vsub.f32 %v3163_v26, %v1630_v33  ;;  %v1624_v24 = vmul.f32 0.6931472, %v2541_v16  ;;  %2554 = vlog2.f32 %v1582_v18 }
 0x4a4   : > { %v2543_v7 = vpop.eup %2542  ;;  %v1576_v17 = vpop.xlane.xlu0 %1575 }
 0x4a5   : > { %v2061_v53 = vpack.c.bf16 %v1682_v22, %v1681_v35  ;;  %v1626_v28 = vmul.f32 0.6931472, %v2543_v7  ;;  %2556 = vlog2.f32 %v1576_v17  ;;  %v1679_v9 = vsub.f32 %v3167_v32, %v1624_v24 }
 0x4a6   : > { %v2545_v19 = vpop.eup %2544  ;;  %v1578_v39 = vpop.xlane.xlu1 %1577 }
 0x4a7   : > { %2117 = vst [vmem:[%s3260_s19 + $0x28] sm:$0xff] %v2061_v53   ;;  %v1680_v34 = vsub.f32 %v3171_v36, %v1626_v28  ;;  %v1636_v21 = vmul.f32 0.6931472, %v2545_v19  ;;  %2558 = vlog2.f32 %v1578_v39 }
 0x4a8   : > { %v2547_v20 = vpop.eup %2546  ;;  %v1588_v40 = vpop.xlane.xlu0 %1587 }
 0x4a9   : > { %v2056_v26 = vpack.c.bf16 %v1680_v34, %v1679_v9  ;;  %v1638_v15 = vmul.f32 0.6931472, %v2547_v20  ;;  %2560 = vlog2.f32 %v1588_v40  ;;  %v1685_v42 = vsub.f32 %v3175_v41, %v1636_v21 }
 0x4aa   : > { %v2549_v58 = vpop.eup %2548  ;;  %v1590_v43 = vpop.xlane.xlu1 %1589 }
 0x4ab   : > { %2116 = vst [vmem:[%s3260_s19 + $0x20] sm:$0xff] %v2056_v26   ;;  %v1686_v23 = vsub.f32 %v3179_v51, %v1638_v15  ;;  %v1632_v46 = vmul.f32 0.6931472, %v2549_v58  ;;  %2562 = vlog2.f32 %v1590_v43 }
 0x4ac   : > { %v2551_v32 = vpop.eup %2550  ;;  %v1584_v49 = vpop.xlane.xlu0 %1583 }
 0x4ad   : > { %v2071_v36 = vpack.c.bf16 %v1686_v23, %v1685_v42  ;;  %v1634_v25 = vmul.f32 0.6931472, %v2551_v32  ;;  %2564 = vlog2.f32 %v1584_v49  ;;  %v1683_v56 = vsub.f32 %v3183_v44, %v1632_v46 }
 0x4ae   : > { %v2553_v54 = vpop.eup %2552  ;;  %v1586_v45 = vpop.xlane.xlu1 %1585 }
 0x4af   : > { %2119 = vst [vmem:[%s3260_s19 + $0x38] sm:$0xff] %v2071_v36   ;;  %v1684_v27 = vsub.f32 %v3187_v62, %v1634_v25  ;;  %v1644_v52 = vmul.f32 0.6931472, %v2553_v54  ;;  %2566 = vlog2.f32 %v1586_v45 }
 0x4b0   : > { %v2555_v41 = vpop.eup %2554  ;;  %v1596_v59 = vpop.xlane.xlu0 %1595 }
 0x4b1   : > { %v2066_v51 = vpack.c.bf16 %v1684_v27, %v1683_v56  ;;  %v1646_v60 = vmul.f32 0.6931472, %v2555_v41  ;;  %2568 = vlog2.f32 %v1596_v59  ;;  %v1689_v0 = vsub.f32 %v3191_v5, %v1644_v52 }
 0x4b2   : > { %v2557_v57 = vpop.eup %2556  ;;  %v1598_v29 = vpop.xlane.xlu1 %1597 }
 0x4b3   : > { %2118 = vst [vmem:[%s3260_s19 + $0x30] sm:$0xff] %v2066_v51   ;;  %v1690_v2 = vsub.f32 %v3195_v13, %v1646_v60  ;;  %v1640_v31 = vmul.f32 0.6931472, %v2557_v57  ;;  %2570 = vlog2.f32 %v1598_v29 }
 0x4b4   : > { %v2559_v44 = vpop.eup %2558  ;;  %v1592_v50 = vpop.xlane.xlu0 %1591 }
 0x4b5   : > { %v2081_v62 = vpack.c.bf16 %v1690_v2, %v1689_v0  ;;  %v1642_v47 = vmul.f32 0.6931472, %v2559_v44  ;;  %2572 = vlog2.f32 %v1592_v50  ;;  %v1687_v33 = vsub.f32 %v3199_v55, %v1640_v31 }
 0x4b6   : > { %v2561_v11 = vpop.eup %2560  ;;  %v1594_v48 = vpop.xlane.xlu1 %1593 }
 0x4b7   : > { %2121 = vst [vmem:[%s3260_s19 + $0x48] sm:$0xff] %v2081_v62   ;;  %v1688_v16 = vsub.f32 %v3203_v3, %v1642_v47  ;;  %v1652_v18 = vmul.f32 0.6931472, %v2561_v11  ;;  %2574 = vlog2.f32 %v1594_v48 }
 0x4b8   : > { %v2563_v5 = vpop.eup %2562  ;;  %v1600_v35 = vpop.xlane.xlu0 %1599 }
 0x4b9   : > { %v2076_v13 = vpack.c.bf16 %v1688_v16, %v1687_v33  ;;  %v1654_v22 = vmul.f32 0.6931472, %v2563_v5  ;;  %2576 = vlog2.f32 %v1600_v35  ;;  %v1693_v7 = vsub.f32 %v3207_v30, %v1652_v18 }
 0x4ba   : > { %v2565_v24 = vpop.eup %2564 }
 0x4bb   : > { %2120 = vst [vmem:[%s3260_s19 + $0x40] sm:$0xff] %v2076_v13   ;;  %v1694_v17 = vsub.f32 %v3211_v38, %v1654_v22  ;;  %v1648_v53 = vmul.f32 0.6931472, %v2565_v24 }
 0x4bc   : > { %v2567_v28 = vpop.eup %2566  ;;  %v1602_v19 = vpop.xlane.xlu1 %1601 }
 0x4bd   : > { %v2091_v55 = vpack.c.bf16 %v1694_v17, %v1693_v7  ;;  %v1650_v3 = vmul.f32 0.6931472, %v2567_v28  ;;  %2578 = vlog2.f32 %v1602_v19  ;;  %v1604_v39 = vpop.xlane.xlu0 %1603  ;;  %v1691_v34 = vsub.f32 %v3215_v63, %v1648_v53 }
 0x4be   : > { %v2569_v9 = vpop.eup %2568  ;;  %2580 = vlog2.f32 %v1604_v39 }
 0x4bf   : > { %2123 = vst [vmem:[%s3260_s19 + $0x58] sm:$0xff] %v2091_v55   ;;  %v1692_v21 = vsub.f32 %v3219_v1, %v1650_v3  ;;  %v1660_v20 = vmul.f32 0.6931472, %v2569_v9 }
 0x4c0   : > { %v2571_v30 = vpop.eup %2570  ;;  %v1606_v40 = vpop.xlane.xlu1 %1605 }
 0x4c1   : > { %v2086_v38 = vpack.c.bf16 %v1692_v21, %v1691_v34  ;;  %v1662_v26 = vmul.f32 0.6931472, %v2571_v30  ;;  %2582 = vlog2.f32 %v1606_v40  ;;  %v1697_v58 = vsub.f32 %v3223_v4, %v1660_v20 }
 0x4c2   : > { %v2573_v15 = vpop.eup %2572 }
 0x4c3   : > { %2122 = vst [vmem:[%s3260_s19 + $0x50] sm:$0xff] %v2086_v38   ;;  %v1698_v43 = vsub.f32 %v3227_v6, %v1662_v26  ;;  %v1656_v42 = vmul.f32 0.6931472, %v2573_v15 }
 0x4c4   : > { %v2575_v23 = vpop.eup %2574 }
 0x4c5   : > { %v2101_v46 = vpack.c.bf16 %v1698_v43, %v1697_v58  ;;  %v1658_v63 = vmul.f32 0.6931472, %v2575_v23  ;;  %v1695_v1 = vsub.f32 %v3231_v8, %v1656_v42 }
 0x4c6   : > { %v2577_v32 = vpop.eup %2576 }
 0x4c7   : > { %2125 = vst [vmem:[%s3260_s19 + $0x68] sm:$0xff] %v2101_v46   ;;  %v1696_v49 = vsub.f32 %v3235_v12, %v1658_v63  ;;  %v1664_v25 = vmul.f32 0.6931472, %v2577_v32 }
 0x4c9   : > { %v2096_v36 = vpack.c.bf16 %v1696_v49, %v1695_v1  ;;  %v1699_v6 = vsub.f32 %v3239_v14, %v1664_v25 }
 0x4ca   : > { %v2579_v54 = vpop.eup %2578 }
 0x4cb   : > { %v2581_v45 = vpop.eup %2580  ;;  %2124 = vst [vmem:[%s3260_s19 + $0x60] sm:$0xff] %v2096_v36   ;;  %v1666_v4 = vmul.f32 0.6931472, %v2579_v54 }
 0x4cc   : > { %v1668_v27 = vmul.f32 0.6931472, %v2581_v45 }
 0x4cd   : > { %v1700_v56 = vsub.f32 %v3243_v37, %v1666_v4 }
 0x4ce   : > { %v2583_v52 = vpop.eup %2582  ;;  %v1701_v8 = vsub.f32 %v3246_v10, %v1668_v27 }
 0x4cf   : > { %v2106_v41 = vpack.c.bf16 %v1700_v56, %v1699_v6  ;;  %v1670_v59 = vmul.f32 0.6931472, %v2583_v52 }
 0x4d1   : > { %2126 = vst [vmem:[%s3260_s19 + $0x70] sm:$0xff] %v2106_v41   ;;  %v1702_v12 = vsub.f32 %v3251_v61, %v1670_v59 }
 0x4d3   : > { %v2111_v51 = vpack.c.bf16 %v1702_v12, %v1701_v8 }
 0x4d5   : > { %2127 = vst [vmem:[%s3260_s19 + $0x78] sm:$0xff] %v2111_v51  }
 0x4d6 PF: > { %s16_s21 = sadd.s32 1, %s2590_s21  }
 0x4d7   : > { %p13_p4 = scmp.ge.s32.totalorder %s16_s21, 4  }
 0x4d9   :  { %15 = sbr.rel (!%p13_p4) target bundleno = 1 (0x1), region = 74 }

</bundles_post_ra>
